<compile_context>
chip_gen: v7x
topology: tpu7x:2x2x1
jax: 0.10.0
libtpu: 0.0.40
codegen_flags: <defaults>
</compile_context>

<pallas_src>
import jax
import jax.numpy as jnp
from jax.experimental import pallas as pl
from jax.experimental.pallas import tpu as pltpu


def _round_up(n, m):
    return ((n + m - 1) // m) * m


def _mine_kernel(x_ref, y_ref, w1_ref, w2_ref, b12_ref, w3_ref, b3_ref, o_ref):
    hp = jax.lax.Precision.HIGHEST
    # h = relu(x @ W1 + y @ W2 + (b1 + b2))   -- weights VMEM-resident, activations streamed.
    h = jnp.dot(x_ref[...], w1_ref[...],
                preferred_element_type=jnp.float32, precision=hp)
    h = h + jnp.dot(y_ref[...], w2_ref[...],
                    preferred_element_type=jnp.float32, precision=hp)
    h = jnp.maximum(h + b12_ref[...], 0.0)                      # (tile_b, H)
    # fc3 (out_features = 1): contract (1, H) against h's H axis -> lane-dense (1, tile_b)
    # output row on the MXU (same contraction structure as q @ k^T), + b3 from SMEM.
    out_row = jax.lax.dot_general(
        w3_ref[...], h,
        dimension_numbers=(((1,), (1,)), ((), ())),
        preferred_element_type=jnp.float32, precision=hp)       # (1, tile_b)
    o_ref[...] = (out_row + b3_ref[0, 0]).astype(o_ref.dtype)


def mine_forward(x, y, params, *, tile_b=1024):
    """x, y: [B, latent_dim] float32. Returns [B, 1] float32."""
    w1, b1, w2, b2, w3, b3 = params
    B, L = x.shape
    H = w1.shape[1]
    assert y.shape == (B, L)
    assert w1.shape == (L, H) and w2.shape == (L, H) and w3.shape == (H, 1)
    assert b1.shape == (1, H) and b2.shape == (1, H) and b3.shape == (1, 1)

    # Tiny parameter-side fusions (constant-folded by XLA; no activation traffic).
    b12 = b1 + b2                        # (1, H)
    w3_row = w3.reshape(1, H)            # (1, H)
    b3_s = b3.reshape(1, 1)              # (1, 1) SMEM scalar

    # --- batch tiling: multiple of 128 for lane-dense output stores; ragged tail via grid ---
    tile_b = max(128, min(int(tile_b), _round_up(B, 128)))
    tile_b = _round_up(tile_b, 128)
    n_tiles = pl.cdiv(B, tile_b)
    rows = n_tiles * tile_b

    flops = 2 * rows * L * H * 2 + 2 * rows * H          # fc1 + fc2 matmuls + fc3 contraction
    bytes_accessed = (
        rows * 2 * L * 4 + rows * 4                      # x,y reads + output write
        + (2 * L * H + 3 * H + 1) * 4                    # resident weights / biases
    )

    out_wide = pl.pallas_call(
        _mine_kernel,
        out_shape=jax.ShapeDtypeStruct((1, rows), jnp.float32),
        grid=(n_tiles,),
        in_specs=[
            pl.BlockSpec((tile_b, L), lambda i: (i, 0)),        # x tile (streamed, pipelined)
            pl.BlockSpec((tile_b, L), lambda i: (i, 0)),        # y tile (streamed, pipelined)
            pl.BlockSpec((L, H), lambda i: (0, 0)),             # W1 (resident)
            pl.BlockSpec((L, H), lambda i: (0, 0)),             # W2 (resident)
            pl.BlockSpec((1, H), lambda i: (0, 0)),             # b1 + b2 (resident)
            pl.BlockSpec((1, H), lambda i: (0, 0)),             # w3 row (resident)
            pl.BlockSpec(memory_space=pltpu.MemorySpace.SMEM),  # b3 scalar
        ],
        out_specs=pl.BlockSpec((1, tile_b), lambda i: (0, i)),  # lane-dense output row
        compiler_params=pltpu.CompilerParams(
            dimension_semantics=("parallel",),                  # 2 TCs on v7x
            vmem_limit_bytes=32 * 1024 * 1024,                  # ample; fits v7x's 64 MiB
        ),
        cost_estimate=pl.CostEstimate(
            flops=flops, transcendentals=0, bytes_accessed=bytes_accessed),
    )(x, y, w1, w2, b12, w3_row, b3_s)

    # Drop ragged-tail garbage columns and present as [B, 1]. (b3 already added in-kernel.)
    return out_wide[0, :B].reshape(B, 1)


def init_params(key, latent_dim, hidden_units):
    """Deterministic init mirroring the PyTorch module's parameter shapes.

    kaiming_normal_ (fan_in mode, gain=sqrt(2)) for the weights; biases use PyTorch's
    default Linear bias init U(-1/sqrt(fan_in), 1/sqrt(fan_in)). Weights are returned
    already transposed to [in, out].
    """
    k1, k2, k3, k4, k5, k6 = jax.random.split(key, 6)

    std1 = (2.0 / latent_dim) ** 0.5
    std3 = (2.0 / hidden_units) ** 0.5
    # PyTorch stores weight as [out, in]; transpose to [in, out] for the kernel.
    w1 = (jax.random.normal(k1, (hidden_units, latent_dim), jnp.float32) * std1).T
    w2 = (jax.random.normal(k2, (hidden_units, latent_dim), jnp.float32) * std1).T
    w3 = (jax.random.normal(k3, (1, hidden_units), jnp.float32) * std3).T

    bb1 = 1.0 / (latent_dim ** 0.5)
    bb3 = 1.0 / (hidden_units ** 0.5)
    b1 = jax.random.uniform(k4, (1, hidden_units), jnp.float32, -bb1, bb1)
    b2 = jax.random.uniform(k5, (1, hidden_units), jnp.float32, -bb1, bb1)
    b3 = jax.random.uniform(k6, (1, 1), jnp.float32, -bb3, bb3)
    return (w1, b1, w2, b2, w3, b3)


if __name__ == "__main__":
    latent_dim = 16
    hidden_units = 32
    batch = 520  # not a tile multiple: exercises the ragged-tail + multi-step grid path

    key = jax.random.PRNGKey(0)
    kx, ky, kp = jax.random.split(key, 3)
    x = jax.random.normal(kx, (batch, latent_dim), jnp.float32)
    y = jax.random.normal(ky, (batch, latent_dim), jnp.float32)
    params = init_params(kp, latent_dim, hidden_units)

    # tile_b=256 keeps the demo small while still exercising a 3-step pipelined grid;
    # real workloads should use the 1024 default (mem-bound: bigger tiles are better).
    out = mine_forward(x, y, params, tile_b=256)
    out = jax.block_until_ready(out)

    # Pure-JAX reference check (same HIGHEST matmul precision as the kernel).
    w1, b1, w2, b2, w3, b3 = params
    hp = jax.lax.Precision.HIGHEST
    h_ref = jnp.maximum(jnp.dot(x, w1, precision=hp) + b1
                        + jnp.dot(y, w2, precision=hp) + b2, 0.0)
    ref = jnp.dot(h_ref, w3, precision=hp) + b3

    assert out.shape == (batch, 1)
    max_err = float(jnp.max(jnp.abs(out - ref)))
    assert jnp.allclose(out, ref, atol=1e-4, rtol=1e-4), max_err

    print("KERNEL_OK")
</pallas_src>

<mosaic_0001>
module attributes {stable_mosaic.version = 11 : i64} {
  func.func @_mine_kernel(%arg0: i32, %arg1: memref<256x16xf32, #tpu.memory_space<vmem>>, %arg2: memref<256x16xf32, #tpu.memory_space<vmem>>, %arg3: memref<16x32xf32, #tpu.memory_space<vmem>>, %arg4: memref<16x32xf32, #tpu.memory_space<vmem>>, %arg5: memref<1x32xf32, #tpu.memory_space<vmem>>, %arg6: memref<1x32xf32, #tpu.memory_space<vmem>>, %arg7: memref<1x1xf32, #tpu.memory_space<smem>>, %arg8: memref<1x256xf32, #tpu.memory_space<vmem>>) attributes {dimension_semantics = [#tpu.dimension_semantics<parallel>], iteration_bounds = array<i64: 3>, scalar_prefetch = 0 : i64, scratch_operands = 0 : i64, tpu.core_type = #tpu.core_type<tc>, window_params = [{transform_indices = @transform_0, window_bounds = array<i64: 256, 16>}, {transform_indices = @transform_1, window_bounds = array<i64: 256, 16>}, {pipeline_mode = #tpu.pipeline_mode<synchronous>, transform_indices = @transform_2, window_bounds = array<i64: 16, 32>}, {pipeline_mode = #tpu.pipeline_mode<synchronous>, transform_indices = @transform_3, window_bounds = array<i64: 16, 32>}, {pipeline_mode = #tpu.pipeline_mode<synchronous>, transform_indices = @transform_4, window_bounds = array<i64: 1, 32>}, {pipeline_mode = #tpu.pipeline_mode<synchronous>, transform_indices = @transform_5, window_bounds = array<i64: 1, 32>}, {transform_indices = @transform_6, window_bounds = array<i64: 1, 1>}, {transform_indices = @transform_7, window_bounds = array<i64: 1, 256>}]} {
    %c0 = arith.constant 0 : index
    %c0_0 = arith.constant 0 : index
    %0 = vector.load %arg1[%c0, %c0_0] : memref<256x16xf32, #tpu.memory_space<vmem>>, vector<256x16xf32>
    %c0_1 = arith.constant 0 : index
    %c0_2 = arith.constant 0 : index
    %1 = vector.load %arg3[%c0_1, %c0_2] : memref<16x32xf32, #tpu.memory_space<vmem>>, vector<16x32xf32>
    %cst = arith.constant dense<0.000000e+00> : vector<256x32xf32>
    %2 = tpu.matmul %0, %1, %cst {dimension_numbers = #tpu.dot_dimension_numbers<[1], [0], [0], [1], [0, 0, 1, 1], [], []>, precision = #tpu.contract_precision<fp32>} : vector<256x16xf32>, vector<16x32xf32>, vector<256x32xf32> -> vector<256x32xf32>
    %c0_3 = arith.constant 0 : index
    %c0_4 = arith.constant 0 : index
    %3 = vector.load %arg2[%c0_3, %c0_4] : memref<256x16xf32, #tpu.memory_space<vmem>>, vector<256x16xf32>
    %c0_5 = arith.constant 0 : index
    %c0_6 = arith.constant 0 : index
    %4 = vector.load %arg4[%c0_5, %c0_6] : memref<16x32xf32, #tpu.memory_space<vmem>>, vector<16x32xf32>
    %cst_7 = arith.constant dense<0.000000e+00> : vector<256x32xf32>
    %5 = tpu.matmul %3, %4, %cst_7 {dimension_numbers = #tpu.dot_dimension_numbers<[1], [0], [0], [1], [0, 0, 1, 1], [], []>, precision = #tpu.contract_precision<fp32>} : vector<256x16xf32>, vector<16x32xf32>, vector<256x32xf32> -> vector<256x32xf32>
    %6 = arith.addf %2, %5 : vector<256x32xf32>
    %c0_8 = arith.constant 0 : index
    %c0_9 = arith.constant 0 : index
    %7 = vector.load %arg5[%c0_8, %c0_9] : memref<1x32xf32, #tpu.memory_space<vmem>>, vector<1x32xf32>
    %8 = vector.broadcast %7 : vector<1x32xf32> to vector<256x32xf32>
    %9 = arith.addf %6, %8 : vector<256x32xf32>
    %cst_10 = arith.constant 0.000000e+00 : f32
    %10 = vector.broadcast %cst_10 : f32 to vector<256x32xf32>
    %11 = arith.maximumf %9, %10 : vector<256x32xf32>
    %c0_11 = arith.constant 0 : index
    %c0_12 = arith.constant 0 : index
    %12 = vector.load %arg6[%c0_11, %c0_12] : memref<1x32xf32, #tpu.memory_space<vmem>>, vector<1x32xf32>
    %cst_13 = arith.constant dense<0.000000e+00> : vector<1x256xf32>
    %13 = tpu.matmul %12, %11, %cst_13 {dimension_numbers = #tpu.dot_dimension_numbers<[1], [1], [0], [0], [0, 0, 1, 0], [], []>, precision = #tpu.contract_precision<fp32>} : vector<1x32xf32>, vector<256x32xf32>, vector<1x256xf32> -> vector<1x256xf32>
    %c0_14 = arith.constant 0 : index
    %c0_15 = arith.constant 0 : index
    %14 = memref.load %arg7[%c0_14, %c0_15] : memref<1x1xf32, #tpu.memory_space<smem>>
    %15 = vector.broadcast %14 : f32 to vector<1x256xf32>
    %16 = arith.addf %13, %15 : vector<1x256xf32>
    %c0_16 = arith.constant 0 : index
    %c0_17 = arith.constant 0 : index
    %17 = vector.load %arg8[%c0_16, %c0_17] : memref<1x256xf32, #tpu.memory_space<vmem>>, vector<1x256xf32>
    tpu.vector_store %arg8[%c0_16, %c0_17], %16 {strides = array<i32>} : memref<1x256xf32, #tpu.memory_space<vmem>>, vector<1x256xf32>,
    return
  }
  func.func @transform_0(%arg0: i32) -> (i32, i32) {
    %c0_i32 = arith.constant 0 : i32
    %c0_i32_0 = arith.constant 0 : i32
    return %arg0, %c0_i32 : i32, i32
  }
  func.func @transform_1(%arg0: i32) -> (i32, i32) {
    %c0_i32 = arith.constant 0 : i32
    %c0_i32_0 = arith.constant 0 : i32
    return %arg0, %c0_i32 : i32, i32
  }
  func.func @transform_2(%arg0: i32) -> (i32, i32) {
    %c0_i32 = arith.constant 0 : i32
    %c0_i32_0 = arith.constant 0 : i32
    %c0_i32_1 = arith.constant 0 : i32
    return %c0_i32, %c0_i32_0 : i32, i32
  }
  func.func @transform_3(%arg0: i32) -> (i32, i32) {
    %c0_i32 = arith.constant 0 : i32
    %c0_i32_0 = arith.constant 0 : i32
    %c0_i32_1 = arith.constant 0 : i32
    return %c0_i32, %c0_i32_0 : i32, i32
  }
  func.func @transform_4(%arg0: i32) -> (i32, i32) {
    %c0_i32 = arith.constant 0 : i32
    %c0_i32_0 = arith.constant 0 : i32
    %c0_i32_1 = arith.constant 0 : i32
    return %c0_i32, %c0_i32_0 : i32, i32
  }
  func.func @transform_5(%arg0: i32) -> (i32, i32) {
    %c0_i32 = arith.constant 0 : i32
    %c0_i32_0 = arith.constant 0 : i32
    %c0_i32_1 = arith.constant 0 : i32
    return %c0_i32, %c0_i32_0 : i32, i32
  }
  func.func @transform_6(%arg0: i32) -> (i32, i32) {
    %c0_i32 = arith.constant 0 : i32
    %c0_i32_0 = arith.constant 0 : i32
    %c0_i32_1 = arith.constant 0 : i32
    return %c0_i32, %c0_i32_0 : i32, i32
  }
  func.func @transform_7(%arg0: i32) -> (i32, i32) {
    %c0_i32 = arith.constant 0 : i32
    %c0_i32_0 = arith.constant 0 : i32
    return %c0_i32, %arg0 : i32, i32
  }
}

</mosaic_0001>

<bundles_post_ra>
// kernel: tpu_custom_call.1
= control target key start
LH: loop header
LB: loop body
LE: loop exit
PB: predicated region body
PF: predicated region fallthrough
CT: control target
= control target key end

     0   :  { %s9307_s0 = inlined_call_operand.vmem [shape: f32[520,16], index: 0, kind: input, shape index: {}]   ;;  %s9308_s1 = inlined_call_operand.vmem [shape: f32[520,16], index: 1, kind: input, shape index: {}]   ;;  %s9309_s2 = inlined_call_operand.vmem [shape: f32[16,32], index: 2, kind: input, shape index: {}]   ;;  %s9310_s3 = inlined_call_operand.vmem [shape: f32[16,32], index: 3, kind: input, shape index: {}]   ;;  %s9311_s4 = inlined_call_operand.vmem [shape: f32[1,32], index: 4, kind: input, shape index: {}]   ;;  %s9312_s5 = inlined_call_operand.vmem [shape: f32[1,32], index: 5, kind: input, shape index: {}]   ;;  %s9313_s6 = inlined_call_operand.<no memory space> [shape: f32[1,1], index: 6, kind: input, shape index: {}]   ;;  %s9314_s7 = inlined_call_operand.hbm [shape: f32[1,768], index: 7, kind: output, shape index: {}]  }
   0x1   :  { %12 = sst [smem:[#allocation2]] %s9313_s6 }
   0x2   :  { %13 = vsyncpa [#allocation4], 0 }
   0x3   :  { %15 = vsyncpa [#allocation4 + $0x1], 0  ;;  %s7331_s26 = smov 0   ;;  %s7333_s27 = smov 0  }
   0x4   :  { %s7335_s28 = smov 0   ;;  %s7337_s29 = smov 0  }
   0x5 LB: > { %s5325_s6 = sadd.s32 4294967295, %s7284_s29   ;;  %s5326_s30 = sadd.s32 4294967294, %s7284_s29   ;;  %s7284_s29 = sphi %s7337_s29, %s9914_s29   ;;  %s7280_s28 = sphi %s7335_s28, %s9913_s28   ;;  %s7276_s27 = sphi %s7333_s27, %s9912_s27   ;;  %s7272_s26 = sphi %s7331_s26, %s9911_s26  }
   0x6   : > { %s7354_s8 = sadd.s32 1, %s7284_s29   ;;  %s185_s9 = sadd.s32 1, %s7280_s28 }
   0x7   : > { %s182_s10 = ssub.s32 %s7284_s29, %s7354_s8  ;;  %p195_p0 = scmp.ne.s32.totalorder %s7280_s28, %s7276_s27 }
   0x8   : > { %p183_p1 = scmp.eq.s32.totalorder %s182_s10, 0  ;;  %p196_p2 = scmp.eq.s32.totalorder %s5325_s6, 2 }
   0x9   : > { %p201_p3 = scmp.ne.s32.totalorder %s7276_s27, %s7272_s26  ;;  %p202_p4 = scmp.eq.s32.totalorder %s5326_s30, 2 }
   0xa   : > { %s7364_s11 = scalar_select %p183_p1, %s7280_s28, %s185_s9  }
   0xb   : > { %p7366_p5 = por %p196_p2, %p195_p0  ;;  %p7370_p6 = por %p202_p4, %p201_p3 }
   0xc   : > { %p5329_p7 = scmp.ge.s32.totalorder %s7284_s29, 1  ;;  %p269_p8 = scmp.lt.s32.totalorder %s7284_s29, 4 }
   0xe   : > { %p270_p9 = pnand %p5329_p7, %p269_p8 }
  0x10   : > { %273 = sbr.rel (%p270_p9) target bundleno = 1426 (0x592), region = 48 }
  0x17   : > { %v409_v0 = vld [vmem:[%s9310_s3] sm:$0xff]  ;;  %v410_v1 = vld [vmem:[%s9310_s3 + $0x8] sm:$0xff]  ;;  %s7382_s18 = sshll.u32 %s5325_s6, 5  ;;  %vm411_vm0 = vcmask 130048   ;;  %vm4262_vm1 = vcmask 261120   ;;  %s311_s21 = sand.u32 1, %s7276_s27  }
  0x18   : > { %v509_v2 = vand.u32 4294901760, %v409_v0  ;;  %v512_v3 = vand.u32 4294901760, %v410_v1  ;;  %p319_p10 = scmp.lt.s32.totalorder %s7382_s18, 64  ;;  %s5330_s22 = sshll.u32 %s311_s21, 1 }
  0x19   : > { %s9265_s30 = scalar_lea.hbm %s9314_s7, %s7382_s18  ;;  %s5241_s9 = scalar_lea.sflag [#allocation4], %s311_s21 }
  0x1a   : > { %v7385_v4 = vpack.c.bf16 %v512_v3, %v509_v2  ;;  %s7388_s19 = scalar_select %p319_p10, %s7382_s18, 64  ;;  %v7390_v5 = vsub.f32 %v409_v0, %v509_v2  ;;  %v7392_v6 = vsub.f32 %v410_v1, %v512_v3 }
  0x1c   : > { %9548 = vst [vmem:[#allocation6_spill] sm:$0xff] %v7390_v5  ;;  %9549 = vst [vmem:[#allocation7_spill] sm:$0xff] %v7392_v6  ;;  %6591 = vmatprep.subr.bf16.mxu0 %v7385_v4  ;;  %s5332_s20 = sshll.u32 %s7388_s19, 3  ;;  %v9316_v7 = vand.u32 4294901760, %v7390_v5  ;;  %v9315_v8 = vand.u32 4294901760, %v7392_v6  ;;  %6579 = vmatprep.subr.bf16.mxu1 %v7385_v4 }
  0x1d   : > { %6593 = vmatpush3.bf16.msra.mxu0 %v7385_v4  ;;  %s7405_s23 = scalar_lea.vmem %s9308_s1, %s5332_s20  ;;  %6581 = vmatpush3.bf16.msra.mxu1 %v7385_v4  ;;  %s7863_s14 = scalar_lea.vmem %s9307_s0, %s5332_s20 }
  0x1e   : > { %v377_v9 = vld [vmem:[%s7405_s23] sm:$0xff]  ;;  %v6594_v10 = vpack.c.bf16 %v9315_v8, %v9316_v7  ;;  %v378_v11 = vld [vmem:[%s7405_s23 + $0x8] sm:$0xff]  ;;  %v379_v12 = vld [vmem:[%s7405_s23 + $0x10] sm:$0xff]  ;;  %s4260_s20 = sld [smem:[#allocation2]] }
  0x1f   : > { %v413_v13 = vsel %vm411_vm0, %v377_v9, 0  ;;  %v416_v14 = vsel %vm411_vm0, %v378_v11, 0  ;;  %v419_v15 = vsel %vm411_vm0, %v379_v12, 0  ;;  %v380_v16 = vld [vmem:[%s7405_s23 + $0x18] sm:$0xff]  ;;  %v381_v17 = vld [vmem:[%s7405_s23 + $0x20] sm:$0xff]  ;;  %v382_v18 = vld [vmem:[%s7405_s23 + $0x28] sm:$0xff] }
  0x20   : > { %v7421_v19 = vand.u32 4294901760, %v413_v13  ;;  %6595 = vmatprep.subr.bf16.mxu0 %v6594_v10  ;;  %v7423_v20 = vand.u32 4294901760, %v416_v14  ;;  %v7425_v21 = vand.u32 4294901760, %v419_v15  ;;  %v422_v22 = vsel %vm411_vm0, %v380_v16, 0  ;;  %v383_v23 = vld [vmem:[%s7405_s23 + $0x30] sm:$0xff]  ;;  %v384_v24 = vld [vmem:[%s7405_s23 + $0x38] sm:$0xff] }
  0x21   : > { %v7430_v25 = vand.u32 4294901760, %v422_v22  ;;  %v425_v26 = vsel %vm411_vm0, %v381_v17, 0  ;;  %v428_v27 = vsel %vm411_vm0, %v382_v18, 0  ;;  %v431_v28 = vsel %vm411_vm0, %v383_v23, 0  ;;  %v385_v37 = vld [vmem:[%s7405_s23 + $0x40] sm:$0xff]  ;;  %v386_v42 = vld [vmem:[%s7405_s23 + $0x48] sm:$0xff] }
  0x22   : > { %v7436_v29 = vsub.f32 %v413_v13, %v7421_v19  ;;  %v7439_v30 = vsub.f32 %v416_v14, %v7423_v20  ;;  %v7442_v31 = vsub.f32 %v419_v15, %v7425_v21  ;;  %v7444_v32 = vand.u32 4294901760, %v425_v26  ;;  %v387_v44 = vld [vmem:[%s7405_s23 + $0x50] sm:$0xff]  ;;  %v388_v53 = vld [vmem:[%s7405_s23 + $0x58] sm:$0xff]  ;;  %v389_v54 = vld [vmem:[%s7405_s23 + $0x60] sm:$0xff] }
  0x23   : > { %v7447_v33 = vsub.f32 %v422_v22, %v7430_v25  ;;  %v7449_v34 = vand.u32 4294901760, %v428_v27  ;;  %v7451_v35 = vand.u32 4294901760, %v431_v28  ;;  %v434_v36 = vsel %vm411_vm0, %v384_v24, 0  ;;  %v390_v63 = vld [vmem:[%s7405_s23 + $0x68] sm:$0xff]  ;;  %v391_v0 = vld [vmem:[%s7405_s23 + $0x70] sm:$0xff]  ;;  %v392_v14 = vld [vmem:[%s7405_s23 + $0x78] sm:$0xff] }
  0x24   : > { %9550 = vst [vmem:[#allocation8_spill] sm:$0xff] %v7436_v29  ;;  %9551 = vst [vmem:[#allocation9_spill] sm:$0xff] %v7439_v30  ;;  %v9335_v38 = vand.u32 4294901760, %v7436_v29  ;;  %v9333_v39 = vand.u32 4294901760, %v7439_v30  ;;  %v9332_v40 = vand.u32 4294901760, %v7442_v31  ;;  %v7459_v41 = vsub.f32 %v425_v26, %v7444_v32  ;;  %v393_v15 = vld [vmem:[%s7405_s23 + $0x80] sm:$0xff] }
  0x25   : > { %9552 = vst [vmem:[#allocation10_spill] sm:$0xff] %v7442_v31  ;;  %9553 = vst [vmem:[#allocation11_spill] sm:$0xff] %v7447_v33  ;;  %v437_v43 = vsel %vm411_vm0, %v385_v37, 0  ;;  %v9330_v45 = vand.u32 4294901760, %v7447_v33  ;;  %v7470_v46 = vsub.f32 %v428_v27, %v7449_v34  ;;  %v7472_v47 = vand.u32 4294901760, %v434_v36  ;;  %v399_v8 = vld [vmem:[%s7405_s23 + $0xb0] sm:$0xff] }
  0x26   : > { %9554 = vst [vmem:[#allocation12_spill] sm:$0xff] %v7459_v41  ;;  %6114 = vmatprep.mubr.f32.mxu0 %v9335_v38  ;;  %v9329_v48 = vand.u32 4294901760, %v7459_v41  ;;  %v7478_v49 = vsub.f32 %v431_v28, %v7451_v35  ;;  %v7480_v50 = vand.u32 4294901760, %v437_v43  ;;  %v440_v51 = vsel %vm411_vm0, %v386_v42, 0  ;;  %v394_v28 = vld [vmem:[%s7405_s23 + $0x88] sm:$0xff] }
  0x27   : > { %6115 = vmatmul.mubr.f32.vlgmr.msra.gmra.mrb[0].mxu0 %v9333_v39  ;;  %9555 = vst [vmem:[#allocation13_spill] sm:$0xff] %v7470_v46  ;;  %v443_v52 = vsel %vm411_vm0, %v387_v44, 0  ;;  %v9327_v55 = vand.u32 4294901760, %v7470_v46  ;;  %v7491_v56 = vsub.f32 %v434_v36, %v7472_v47  ;;  %v7493_v57 = vand.u32 4294901760, %v440_v51  ;;  %v395_v36 = vld [vmem:[%s7405_s23 + $0x90] sm:$0xff]  ;;  %v405_v39 = vld [vmem:[%s7405_s23 + $0xe0] sm:$0xff] }
  0x28   : > { %6597 = vmatpush3.bf16.msra.mxu0 %v6594_v10  ;;  %6117 = vmatprep.mubr.f32.mxu0 %v9332_v40  ;;  %9556 = vst [vmem:[#allocation14_spill] sm:$0xff] %v7478_v49  ;;  %v9326_v58 = vand.u32 4294901760, %v7478_v49  ;;  %v7499_v59 = vsub.f32 %v437_v43, %v7480_v50  ;;  %v7501_v60 = vand.u32 4294901760, %v443_v52  ;;  %v446_v61 = vsel %vm411_vm0, %v388_v53, 0  ;;  %v406_v5 = vld [vmem:[%s7405_s23 + $0xe8] sm:$0xff] }
  0x29   : > { %6599 = vmatprep.subr.bf16.mxu0 %v7385_v4  ;;  %9557 = vst [vmem:[#allocation15_spill] sm:$0xff] %v7491_v56  ;;  %v449_v62 = vsel %vm411_vm0, %v389_v54, 0  ;;  %v9324_v1 = vand.u32 4294901760, %v7491_v56  ;;  %v7511_v2 = vsub.f32 %v440_v51, %v7493_v57  ;;  %v7513_v3 = vand.u32 4294901760, %v446_v61 }
  0x2a   : > { %9558 = vst [vmem:[#allocation16_spill] sm:$0xff] %v7499_v59  ;;  %v9323_v9 = vand.u32 4294901760, %v7499_v59  ;;  %v7519_v10 = vsub.f32 %v443_v52, %v7501_v60  ;;  %v7521_v11 = vand.u32 4294901760, %v449_v62  ;;  %v452_v12 = vsel %vm411_vm0, %v390_v63, 0 }
  0x2b   : > { %6118 = vmatmul.mubr.f32.gmra.mrb[2].mxu0 %v9330_v45  ;;  %9559 = vst [vmem:[#allocation17_spill] sm:$0xff] %v7511_v2  ;;  %v455_v13 = vsel %vm411_vm0, %v391_v0, 0  ;;  %v9321_v16 = vand.u32 4294901760, %v7511_v2  ;;  %v7531_v17 = vsub.f32 %v446_v61, %v7513_v3  ;;  %v7533_v18 = vand.u32 4294901760, %v452_v12  ;;  %v396_v61 = vld [vmem:[%s7405_s23 + $0x98] sm:$0xff] }
  0x2c   : > { %6120 = vmatprep.mubr.f32.mxu0 %v9329_v48  ;;  %9560 = vst [vmem:[#allocation18_spill] sm:$0xff] %v7519_v10  ;;  %v9320_v22 = vand.u32 4294901760, %v7519_v10  ;;  %v7539_v23 = vsub.f32 %v449_v62, %v7521_v11  ;;  %v7541_v24 = vand.u32 4294901760, %v455_v13  ;;  %v458_v26 = vsel %vm411_vm0, %v392_v14, 0  ;;  %v397_v62 = vld [vmem:[%s7405_s23 + $0xa0] sm:$0xff] }
  0x2d   : > { %9561 = vst [vmem:[#allocation19_spill] sm:$0xff] %v7531_v17  ;;  %v461_v27 = vsel %vm411_vm0, %v393_v15, 0  ;;  %v9318_v37 = vand.u32 4294901760, %v7531_v17  ;;  %v7551_v42 = vsub.f32 %v452_v12, %v7533_v18  ;;  %v7553_v43 = vand.u32 4294901760, %v458_v26 }
  0x2e   : > { %9562 = vst [vmem:[#allocation20_spill] sm:$0xff] %v7539_v23  ;;  %v9317_v44 = vand.u32 4294901760, %v7539_v23  ;;  %v7559_v51 = vsub.f32 %v455_v13, %v7541_v24  ;;  %v7561_v52 = vand.u32 4294901760, %v461_v27  ;;  %v464_v53 = vsel %vm411_vm0, %v394_v28, 0 }
  0x2f   : > { %6121 = vmatmul.mubr.f32.gmra.mrb[4].mxu0 %v9327_v55  ;;  %9563 = vst [vmem:[#allocation21_spill] sm:$0xff] %v7551_v42  ;;  %v467_v54 = vsel %vm411_vm0, %v395_v36, 0  ;;  %v9319_v63 = vand.u32 4294901760, %v7551_v42  ;;  %v7571_v0 = vsub.f32 %v458_v26, %v7553_v43  ;;  %v7573_v12 = vand.u32 4294901760, %v464_v53  ;;  %v398_v26 = vld [vmem:[%s7405_s23 + $0xa8] sm:$0xff]  ;;  %v403_v55 = vld [vmem:[%s7405_s23 + $0xd0] sm:$0xff] }
  0x30   : > { %6123 = vmatprep.mubr.f32.mxu0 %v9326_v58  ;;  %9564 = vst [vmem:[#allocation22_spill] sm:$0xff] %v7559_v51  ;;  %v9322_v13 = vand.u32 4294901760, %v7559_v51  ;;  %v7579_v14 = vsub.f32 %v461_v27, %v7561_v52  ;;  %v7581_v15 = vand.u32 4294901760, %v467_v54  ;;  %v470_v28 = vsel %vm411_vm0, %v396_v61, 0 }
  0x31   : > { %9565 = vst [vmem:[#allocation23_spill] sm:$0xff] %v7571_v0  ;;  %v473_v36 = vsel %vm411_vm0, %v397_v62, 0  ;;  %v9325_v7 = vand.u32 4294901760, %v7571_v0  ;;  %v7593_v27 = vand.u32 4294901760, %v470_v28  ;;  %v491_v40 = vsel %vm411_vm0, %v403_v55, 0 }
  0x32   : > { %9566 = vst [vmem:[#allocation24_spill] sm:$0xff] %v7579_v14  ;;  %v7599_v61 = vsub.f32 %v467_v54, %v7581_v15  ;;  %v7601_v62 = vand.u32 4294901760, %v473_v36  ;;  %v7661_v55 = vand.u32 4294901760, %v491_v40 }
  0x33   : > { %6124 = vmatmul.mubr.f32.gmra.mrb[6].mxu0 %v9324_v1 }
  0x34   : > { %6126 = vmatprep.mubr.f32.mxu0 %v9323_v9  ;;  %9568 = vst [vmem:[#allocation26_spill] sm:$0xff] %v7599_v61  ;;  %v7611_v9 = vsub.f32 %v470_v28, %v7593_v27  ;;  %v9334_v1 = vand.u32 4294901760, %v7599_v61  ;;  %v402_v28 = vld [vmem:[%s7405_s23 + $0xc8] sm:$0xff] }
  0x36   : > { %9569 = vst [vmem:[#allocation27_spill] sm:$0xff] %v7611_v9 }
  0x37   : > { %6127 = vmatmul.mubr.f32.gmra.mrb[8].mxu0 %v9321_v16  ;;  %v401_v16 = vld [vmem:[%s7405_s23 + $0xc0] sm:$0xff] }
  0x38   : > { %6129 = vmatprep.mubr.f32.mxu0 %v9320_v22  ;;  %v479_v22 = vsel %vm411_vm0, %v399_v8, 0  ;;  %v485_v58 = vsel %vm411_vm0, %v401_v16, 0 }
  0x39   : > { %v7621_v8 = vand.u32 4294901760, %v479_v22  ;;  %v7641_v16 = vand.u32 4294901760, %v485_v58 }
  0x3b   : > { %6130 = vmatmul.mubr.f32.gmra.mrb[10].mxu0 %v9318_v37  ;;  %v9328_v37 = vand.u32 4294901760, %v7579_v14 }
  0x3c   : > { %6132 = vmatprep.mubr.f32.mxu0 %v9317_v44  ;;  %v7591_v44 = vsub.f32 %v464_v53, %v7573_v12  ;;  %v400_v53 = vld [vmem:[%s7405_s23 + $0xb8] sm:$0xff] }
  0x3e   : > { %9567 = vst [vmem:[#allocation25_spill] sm:$0xff] %v7591_v44 }
  0x3f   : > { %6133 = vmatmul.mubr.f32.gmra.mrb[12].mxu0 %v9319_v63  ;;  %v476_v63 = vsel %vm411_vm0, %v398_v26, 0  ;;  %v7619_v26 = vsub.f32 %v473_v36, %v7601_v62 }
  0x40   : > { %6135 = vmatprep.mubr.f32.mxu0 %v9322_v13  ;;  %v9331_v13 = vand.u32 4294901760, %v7591_v44  ;;  %v7613_v54 = vand.u32 4294901760, %v476_v63 }
  0x41   : > { %9570 = vst [vmem:[#allocation28_spill] sm:$0xff] %v7619_v26  ;;  %v9345_v45 = vand.u32 4294901760, %v7619_v26  ;;  %v408_v26 = vld [vmem:[%s7405_s23 + $0xf8] sm:$0xff] }
  0x42   : > { %v7631_v48 = vsub.f32 %v476_v63, %v7613_v54  ;;  %v404_v63 = vld [vmem:[%s7405_s23 + $0xd8] sm:$0xff] }
  0x43   : > { %6136 = vmatmul.mubr.f32.gmra.mrb[14].mxu0 %v9325_v7  ;;  %v482_v7 = vsel %vm411_vm0, %v400_v53, 0  ;;  %v7639_v53 = vsub.f32 %v479_v22, %v7621_v8 }
  0x44   : > { %6138 = vmatprep.mubr.f32.mxu0 %v9328_v37  ;;  %v9338_v37 = vand.u32 4294901760, %v7611_v9  ;;  %9571 = vst [vmem:[#allocation29_spill] sm:$0xff] %v7631_v48  ;;  %v7633_v36 = vand.u32 4294901760, %v482_v7  ;;  %v9575_v9 = vand.u32 4294901760, %v7631_v48  ;;  %v500_v48 = vsel %vm411_vm0, %v406_v5, 0 }
  0x45   : > { %9572 = vst [vmem:[#allocation30_spill] sm:$0xff] %v7639_v53 }
  0x46   : > { %v7651_v38 = vsub.f32 %v482_v7, %v7633_v36  ;;  %v407_v7 = vld [vmem:[%s7405_s23 + $0xf0] sm:$0xff]  ;;  %s313_s23 = scalar_lea.vmem [#allocation3], %s5330_s22 }
  0x47   : > { %6139 = vmatmul.mubr.f32.gmra.mrb[16].mxu0 %v9331_v13  ;;  %v488_v13 = vsel %vm411_vm0, %v402_v28, 0  ;;  %v7659_v28 = vsub.f32 %v485_v58, %v7641_v16  ;;  %v9578_v58 = vand.u32 4294901760, %v7639_v53  ;;  %s5255_s24 = sshll.u32 %s313_s23, 4  ;;  %s9267_s24 = int_to_ptr.vmem [resolvable:$true] %s5255_s24 }
  0x48   : > { %6141 = vmatprep.mubr.f32.mxu0 %v9334_v1  ;;  %9573 = vst [vmem:[#allocation31_spill] sm:$0xff] %v7651_v38  ;;  %v7653_v22 = vand.u32 4294901760, %v488_v13  ;;  %v497_v1 = vsel %vm411_vm0, %v405_v39, 0  ;;  %s7222_s10 = scalar_lea.vmem %s9267_s24, 32 }
  0x49   : > { %9574 = vst [vmem:[#allocation32_spill] sm:$0xff] %v7659_v28  ;;  %v9358_v61 = vand.u32 4294901760, %v7659_v28  ;;  %v7681_v39 = vand.u32 4294901760, %v497_v1  ;;  %p7223_p11 = scmp.ne.s32.totalorder %s9267_s24, %s7222_s10 }
  0x4b   : > { %6142 = vmatmul.mubr.f32.gmra.mrb[18].mxu0 %v9338_v37  ;;  %v494_v37 = vsel %vm411_vm0, %v404_v63, 0  ;;  %v7679_v63 = vsub.f32 %v491_v40, %v7661_v55  ;;  %9580 = vst [vmem:[#allocation36_spill] sm:$0xff] %v7681_v39  ;;  %v7698_v5 = vsub.f32 %v497_v1, %v7681_v39  ;;  %p7224_p12 = pnand %p7223_p11, %p7366_p5 }
  0x4c   : > { %6144 = vmatprep.mubr.f32.mxu0 %v9345_v45  ;;  %v7671_v45 = vsub.f32 %v488_v13, %v7653_v22  ;;  %v7673_v6 = vand.u32 4294901760, %v494_v37  ;;  %v9581_v13 = vand.u32 4294901760, %v7651_v38  ;;  %v506_v38 = vsel %vm411_vm0, %v408_v26, 0 }
  0x4d   : > { %9579 = vst [vmem:[#allocation35_spill] sm:$0xff] %v7679_v63  ;;  %v9360_v40 = vand.u32 4294901760, %v7679_v63  ;;  %9584 = vst [vmem:[#allocation39_spill] sm:$0xff] %v7698_v5  ;;  %v7709_v14 = vand.u32 4294901760, %v506_v38  ;;  %v9362_v1 = vand.u32 4294901760, %v7698_v5  ;;  %p7225_p13 = pneg %p7224_p12 }
  0x4e   : > { %9576 = vst [vmem:[#allocation33_spill] sm:$0xff] %v7671_v45  ;;  %9577 = vst [vmem:[#allocation34_spill] sm:$0xff] %v7673_v6  ;;  %v9359_v44 = vand.u32 4294901760, %v7671_v45  ;;  %v7690_v53 = vsub.f32 %v494_v37, %v7673_v6 }
  0x4f   : > { %6145 = vmatmul.mubr.f32.gmra.mrb[20].mxu0 %v9575_v9  ;;  %v503_v9 = vsel %vm411_vm0, %v407_v7, 0 }
  0x50   : > { %6147 = vmatprep.mubr.f32.mxu0 %v9578_v58  ;;  %9582 = vst [vmem:[#allocation37_spill] sm:$0xff] %v7690_v53  ;;  %v7692_v58 = vand.u32 4294901760, %v500_v48  ;;  %v7700_v7 = vand.u32 4294901760, %v503_v9  ;;  %v9361_v37 = vand.u32 4294901760, %v7690_v53 }
  0x52   : > { %9583 = vst [vmem:[#allocation38_spill] sm:$0xff] %v7692_v58 }
  0x53   : > { %6148 = vmatmul.mubr.f32.gmra.mrb[22].mxu0 %v9581_v13  ;;  %v7707_v13 = vsub.f32 %v500_v48, %v7692_v58 }
  0x54   : > { %6150 = vmatprep.mubr.f32.mxu0 %v9358_v61  ;;  %v7715_v61 = vsub.f32 %v503_v9, %v7700_v7  ;;  %v376_v9 = vld [vmem:[%s9309_s2 + $0x8] sm:$0xff] }
  0x55   : > { %9585 = vst [vmem:[#allocation40_spill] sm:$0xff] %v7707_v13  ;;  %v9367_v26 = vand.u32 4294901760, %v7707_v13 }
  0x56   : > { %9586 = vst [vmem:[#allocation41_spill] sm:$0xff] %v7715_v61  ;;  %v9366_v48 = vand.u32 4294901760, %v7715_v61 }
  0x57   : > { %6151 = vmatmul.mubr.f32.gmra.mrb[24].mxu0 %v9359_v44  ;;  %v7721_v44 = vsub.f32 %v506_v38, %v7709_v14 }
  0x58   : > { %6153 = vmatprep.mubr.f32.mxu0 %v9360_v40  ;;  %v375_v40 = vld [vmem:[%s9309_s2] sm:$0xff] }
  0x59   : > { %9587 = vst [vmem:[#allocation42_spill] sm:$0xff] %v7721_v44  ;;  %v2397_v38 = vand.u32 4294901760, %v375_v40 }
  0x5b   : > { %6154 = vmatmul.mubr.f32.gmra.mrb[26].mxu0 %v9361_v37  ;;  %v9365_v37 = vand.u32 4294901760, %v7721_v44 }
  0x5c   : > { %6156 = vmatprep.mubr.f32.mxu0 %v9362_v1  ;;  %v2400_v1 = vand.u32 4294901760, %v376_v9 }
  0x5e   : > { %v7740_v5 = vpack.c.bf16 %v2400_v1, %v2397_v38 }
  0x5f   : > { %6157 = vmatmul.mubr.f32.gmra.mrb[28].mxu0 %v9367_v26 }
  0x60   : > { %6159 = vmatprep.mubr.f32.mxu0 %v9366_v48  ;;  %9588 = vst [vmem:[#allocation43_spill] sm:$0xff] %v7740_v5 }
  0x63   : > { %6160 = vmatmul.mubr.f32.gmra.mrb[30].mxu0 %v9365_v37  ;;  %v7770_v37 = vsub.f32 %v376_v9, %v2400_v1 }
  0x64   : > { %6166 = vmatprep.mubr.f32.mxu0 %v7421_v19 }
  0x65   : > { %9590 = vst [vmem:[#allocation45_spill] sm:$0xff] %v7770_v37  ;;  %v9377_v26 = vand.u32 4294901760, %v7770_v37 }
  0x67   : > { %6167 = vmatmul.mubr.f32.vlgmr.msra.gmra.mrb[0].mxu0 %v7423_v20 }
  0x68   : > { %6601 = vmatpush3.bf16.msra.mxu0 %v7385_v4  ;;  %6169 = vmatprep.mubr.f32.mxu0 %v7425_v21  ;;  %v7768_v4 = vsub.f32 %v375_v40, %v2397_v38  ;;  %v2794_v40 = vsub.f32 %v7770_v37, %v9377_v26  ;;  %v9591_v38 = vand.u32 4294901760, %v7436_v29 }
  0x69   : > { %6603 = vmatprep.subr.bf16.mxu0 %v7740_v5 }
  0x6a   : > { %9589 = vst [vmem:[#allocation44_spill] sm:$0xff] %v7768_v4  ;;  %v9376_v48 = vand.u32 4294901760, %v7768_v4  ;;  %v2795_v9 = vand.u32 4294901760, %v2794_v40  ;;  %v578_v61 = vsub.f32 %v7436_v29, %v9591_v38  ;;  %v9593_v40 = vand.u32 4294901760, %v7442_v31  ;;  %v9654_v29 = vld [vmem:[#allocation38_spill] sm:$0xff] }
  0x6b   : > { %6170 = vmatmul.mubr.f32.gmra.mrb[2].mxu0 %v7430_v25 }
  0x6c   : > { %6172 = vmatprep.mubr.f32.mxu0 %v7444_v32  ;;  %v2787_v44 = vsub.f32 %v7768_v4, %v9376_v48  ;;  %v579_v48 = vand.u32 4294901760, %v578_v61  ;;  %v598_v38 = vsub.f32 %v7442_v31, %v9593_v40 }
  0x6e   : > { %v2788_v1 = vand.u32 4294901760, %v2787_v44  ;;  %5958 = vmatprep.mubr.f32.mxu1 %v579_v48  ;;  %v599_v61 = vand.u32 4294901760, %v598_v38  ;;  %v9595_v48 = vand.u32 4294901760, %v7459_v41 }
  0x6f   : > { %6173 = vmatmul.mubr.f32.gmra.mrb[4].mxu0 %v7449_v34 }
  0x70   : > { %6175 = vmatprep.mubr.f32.mxu0 %v7451_v35  ;;  %v7798_v44 = vpack.c.bf16 %v2795_v9, %v2788_v1  ;;  %v618_v1 = vsub.f32 %v7459_v41, %v9595_v48 }
  0x72   : > { %v619_v40 = vand.u32 4294901760, %v618_v1  ;;  %v9599_v1 = vand.u32 4294901760, %v7499_v59 }
  0x73   : > { %6176 = vmatmul.mubr.f32.gmra.mrb[6].mxu0 %v7472_v47 }
  0x74   : > { %6178 = vmatprep.mubr.f32.mxu0 %v7480_v50 }
  0x77   : > { %6179 = vmatmul.mubr.f32.gmra.mrb[8].mxu0 %v7493_v57 }
  0x78   : > { %6181 = vmatprep.mubr.f32.mxu0 %v7501_v60 }
  0x7b   : > { %6182 = vmatmul.mubr.f32.gmra.mrb[10].mxu0 %v7513_v3 }
  0x7c   : > { %6184 = vmatprep.mubr.f32.mxu0 %v7521_v11 }
  0x7f   : > { %6185 = vmatmul.mubr.f32.gmra.mrb[12].mxu0 %v7533_v18 }
  0x80   : > { %6187 = vmatprep.mubr.f32.mxu0 %v7541_v24 }
  0x83   : > { %6188 = vmatmul.mubr.f32.gmra.mrb[14].mxu0 %v7553_v43 }
  0x84   : > { %6190 = vmatprep.mubr.f32.mxu0 %v7561_v52 }
  0x87   : > { %6191 = vmatmul.mubr.f32.gmra.mrb[16].mxu0 %v7573_v12 }
  0x88   : > { %6193 = vmatprep.mubr.f32.mxu0 %v7581_v15 }
  0x8b   : > { %6194 = vmatmul.mubr.f32.gmra.mrb[18].mxu0 %v7593_v27 }
  0x8c   : > { %6196 = vmatprep.mubr.f32.mxu0 %v7601_v62 }
  0x8f   : > { %6197 = vmatmul.mubr.f32.gmra.mrb[20].mxu0 %v7613_v54 }
  0x90   : > { %6199 = vmatprep.mubr.f32.mxu0 %v7621_v8 }
  0x93   : > { %6200 = vmatmul.mubr.f32.gmra.mrb[22].mxu0 %v7633_v36 }
  0x94   : > { %6202 = vmatprep.mubr.f32.mxu0 %v7641_v16 }
  0x97   : > { %6203 = vmatmul.mubr.f32.gmra.mrb[24].mxu0 %v7653_v22 }
  0x98   : > { %6205 = vmatprep.mubr.f32.mxu0 %v7661_v55 }
  0x9b   : > { %6206 = vmatmul.mubr.f32.gmra.mrb[26].mxu0 %v7673_v6 }
  0x9c   : > { %6208 = vmatprep.mubr.f32.mxu0 %v7681_v39  ;;  %v9592_v39 = vand.u32 4294901760, %v7439_v30 }
  0x9e   : > { %v588_v6 = vsub.f32 %v7439_v30, %v9592_v39  ;;  %v9594_v39 = vand.u32 4294901760, %v7447_v33 }
  0x9f   : > { %6209 = vmatmul.mubr.f32.gmra.mrb[28].mxu0 %v7692_v58  ;;  %v7796_v58 = vpack.c.bf16 %v7770_v37, %v7768_v4  ;;  %v9611_v4 = vld [vmem:[#allocation26_spill] sm:$0xff] }
  0xa0   : > { %6211 = vmatprep.mubr.f32.mxu0 %v7700_v7  ;;  %v589_v26 = vand.u32 4294901760, %v588_v6  ;;  %v608_v30 = vsub.f32 %v7447_v33, %v9594_v39 }
  0xa2   : > { %5959 = vmatmul.mubr.f32.vlgmr.msra.gmra.mrb[0].mxu1 %v589_v26  ;;  %v609_v6 = vand.u32 4294901760, %v608_v30  ;;  %v9596_v26 = vand.u32 4294901760, %v7470_v46  ;;  %v9597_v30 = vand.u32 4294901760, %v7478_v49 }
  0xa3   : > { %6212 = vmatmul.mubr.f32.gmra.mrb[30].mxu0 %v7709_v14  ;;  %5961 = vmatprep.mubr.f32.mxu1 %v599_v61  ;;  %v9598_v61 = vand.u32 4294901760, %v7491_v56 }
  0xa4   : > { %6218 = vmatprep.mubr.f32.mxu0 %v7421_v19  ;;  %v628_v9 = vsub.f32 %v7470_v46, %v9596_v26  ;;  %v638_v39 = vsub.f32 %v7478_v49, %v9597_v30  ;;  %v9643_v46 = vld [vmem:[#allocation36_spill] sm:$0xff] }
  0xa6   : > { %5962 = vmatmul.mubr.f32.gmra.mrb[2].mxu1 %v609_v6  ;;  %v629_v38 = vand.u32 4294901760, %v628_v9  ;;  %v648_v6 = vsub.f32 %v7491_v56, %v9598_v61  ;;  %v639_v48 = vand.u32 4294901760, %v638_v39  ;;  %v658_v9 = vsub.f32 %v7499_v59, %v9599_v1  ;;  %v351_v59 = vld [vmem:[%s7863_s14 + $0x40] sm:$0xff] }
  0xa7   : > { %6219 = vmatmul.mubr.f32.vlgmr.msra.gmra.mrb[0].mxu0 %v7423_v20  ;;  %5964 = vmatprep.mubr.f32.mxu1 %v619_v40  ;;  %v9600_v40 = vand.u32 4294901760, %v7511_v2  ;;  %v9601_v39 = vand.u32 4294901760, %v7519_v10 }
  0xa8   : > { %6605 = vmatpush3.bf16.msra.mxu0 %v7740_v5  ;;  %6221 = vmatprep.mubr.f32.mxu0 %v7425_v21  ;;  %v649_v26 = vand.u32 4294901760, %v648_v6  ;;  %v659_v30 = vand.u32 4294901760, %v658_v9  ;;  %v9603_v9 = vand.u32 4294901760, %v7539_v23  ;;  %v352_v5 = vld [vmem:[%s7863_s14 + $0x48] sm:$0xff] }
  0xa9   : > { %6607 = vmatprep.subr.bf16.mxu0 %v7798_v44  ;;  %v678_v6 = vsub.f32 %v7519_v10, %v9601_v39  ;;  %v348_v10 = vld [vmem:[%s7863_s14 + $0x28] sm:$0xff] }
  0xaa   : > { %5965 = vmatmul.mubr.f32.gmra.mrb[4].mxu1 %v629_v38  ;;  %v668_v38 = vsub.f32 %v7511_v2, %v9600_v40 }
  0xab   : > { %6222 = vmatmul.mubr.f32.gmra.mrb[2].mxu0 %v7430_v25  ;;  %5967 = vmatprep.mubr.f32.mxu1 %v639_v48  ;;  %v9602_v48 = vand.u32 4294901760, %v7531_v17  ;;  %v679_v1 = vand.u32 4294901760, %v678_v6 }
  0xac   : > { %6224 = vmatprep.mubr.f32.mxu0 %v7444_v32  ;;  %v669_v61 = vand.u32 4294901760, %v668_v38  ;;  %v698_v38 = vsub.f32 %v7539_v23, %v9603_v9 }
  0xae   : > { %5968 = vmatmul.mubr.f32.gmra.mrb[6].mxu1 %v649_v26  ;;  %v688_v26 = vsub.f32 %v7531_v17, %v9602_v48  ;;  %v699_v39 = vand.u32 4294901760, %v698_v38  ;;  %v9605_v48 = vand.u32 4294901760, %v7559_v51  ;;  %v9607_v38 = vld [vmem:[#allocation24_spill] sm:$0xff] }
  0xaf   : > { %6225 = vmatmul.mubr.f32.gmra.mrb[4].mxu0 %v7449_v34  ;;  %5970 = vmatprep.mubr.f32.mxu1 %v659_v30  ;;  %v9604_v30 = vand.u32 4294901760, %v7551_v42 }
  0xb0   : > { %6227 = vmatprep.mubr.f32.mxu0 %v7451_v35  ;;  %v689_v40 = vand.u32 4294901760, %v688_v26  ;;  %v718_v26 = vsub.f32 %v7559_v51, %v9605_v48 }
  0xb2   : > { %5971 = vmatmul.mubr.f32.gmra.mrb[8].mxu1 %v669_v61  ;;  %v708_v61 = vsub.f32 %v7551_v42, %v9604_v30  ;;  %v719_v9 = vand.u32 4294901760, %v718_v26 }
  0xb3   : > { %6228 = vmatmul.mubr.f32.gmra.mrb[6].mxu0 %v7472_v47  ;;  %5973 = vmatprep.mubr.f32.mxu1 %v679_v1  ;;  %v9606_v1 = vand.u32 4294901760, %v7571_v0 }
  0xb4   : > { %6230 = vmatprep.mubr.f32.mxu0 %v7480_v50  ;;  %v709_v6 = vand.u32 4294901760, %v708_v61  ;;  %v9608_v61 = vand.u32 4294901760, %v9607_v38 }
  0xb6   : > { %5974 = vmatmul.mubr.f32.gmra.mrb[10].mxu1 %v689_v40  ;;  %v728_v40 = vsub.f32 %v7571_v0, %v9606_v1 }
  0xb7   : > { %6231 = vmatmul.mubr.f32.gmra.mrb[8].mxu0 %v7493_v57  ;;  %5976 = vmatprep.mubr.f32.mxu1 %v699_v39  ;;  %v738_v39 = vsub.f32 %v9607_v38, %v9608_v61  ;;  %v9613_v61 = vld [vmem:[#allocation27_spill] sm:$0xff] }
  0xb8   : > { %6233 = vmatprep.mubr.f32.mxu0 %v7501_v60  ;;  %v729_v30 = vand.u32 4294901760, %v728_v40  ;;  %v343_v40 = vld [vmem:[%s7863_s14] sm:$0xff] }
  0xb9   : > { %v739_v1 = vand.u32 4294901760, %v738_v39 }
  0xba   : > { %5977 = vmatmul.mubr.f32.gmra.mrb[12].mxu1 %v709_v6  ;;  %v9609_v6 = vld [vmem:[#allocation25_spill] sm:$0xff] }
  0xbb   : > { %6234 = vmatmul.mubr.f32.gmra.mrb[10].mxu0 %v7513_v3  ;;  %5979 = vmatprep.mubr.f32.mxu1 %v719_v9  ;;  %v9610_v48 = vand.u32 4294901760, %v9609_v6  ;;  %v9612_v9 = vand.u32 4294901760, %v9611_v4 }
  0xbc   : > { %6236 = vmatprep.mubr.f32.mxu0 %v7521_v11 }
  0xbd   : > { %v748_v26 = vsub.f32 %v9609_v6, %v9610_v48  ;;  %v758_v0 = vsub.f32 %v9611_v4, %v9612_v9  ;;  %v2301_v48 = vsel %vm411_vm0, %v343_v40, 0  ;;  %v344_v6 = vld [vmem:[%s7863_s14 + $0x8] sm:$0xff]  ;;  %v345_v40 = vld [vmem:[%s7863_s14 + $0x10] sm:$0xff] }
  0xbe   : > { %5980 = vmatmul.mubr.f32.gmra.mrb[14].mxu1 %v729_v30  ;;  %v9614_v30 = vand.u32 4294901760, %v9613_v61  ;;  %v7887_v4 = vand.u32 4294901760, %v2301_v48 }
  0xbf   : > { %6237 = vmatmul.mubr.f32.gmra.mrb[12].mxu0 %v7533_v18  ;;  %v749_v37 = vand.u32 4294901760, %v748_v26  ;;  %5982 = vmatprep.mubr.f32.mxu1 %v739_v1  ;;  %v759_v39 = vand.u32 4294901760, %v758_v0  ;;  %v9615_v1 = vld [vmem:[#allocation28_spill] sm:$0xff]  ;;  %v2304_v0 = vsel %vm411_vm0, %v344_v6, 0  ;;  %v9623_v6 = vld [vmem:[#allocation31_spill] sm:$0xff] }
  0xc0   : > { %6239 = vmatprep.mubr.f32.mxu0 %v7541_v24  ;;  %v768_v38 = vsub.f32 %v9613_v61, %v9614_v30  ;;  %v9616_v51 = vand.u32 4294901760, %v9615_v1  ;;  %v7902_v23 = vand.u32 4294901760, %v2304_v0 }
  0xc2   : > { %5983 = vmatmul.mubr.f32.gmra.mrb[16].mxu1 %v749_v37  ;;  %v769_v26 = vand.u32 4294901760, %v768_v38  ;;  %v778_v9 = vsub.f32 %v9615_v1, %v9616_v51  ;;  %v9617_v37 = vld [vmem:[#allocation29_spill] sm:$0xff]  ;;  %v9619_v51 = vld [vmem:[#allocation30_spill] sm:$0xff]  ;;  %v7900_v1 = vsub.f32 %v2301_v48, %v7887_v4  ;;  %9622 = vst [vmem:[#allocation47_spill] sm:$0xff] %v7902_v23 }
  0xc3   : > { %6240 = vmatmul.mubr.f32.gmra.mrb[14].mxu0 %v7553_v43  ;;  %5985 = vmatprep.mubr.f32.mxu1 %v759_v39  ;;  %v9618_v42 = vand.u32 4294901760, %v9617_v37  ;;  %v9620_v39 = vand.u32 4294901760, %v9619_v51  ;;  %v347_v48 = vld [vmem:[%s7863_s14 + $0x20] sm:$0xff] }
  0xc4   : > { %6242 = vmatprep.mubr.f32.mxu0 %v7561_v52  ;;  %v779_v61 = vand.u32 4294901760, %v778_v9  ;;  %9621 = vst [vmem:[#allocation46_spill] sm:$0xff] %v7900_v1 }
  0xc5   : > { %v788_v30 = vsub.f32 %v9617_v37, %v9618_v42  ;;  %v2307_v42 = vsel %vm411_vm0, %v345_v40, 0  ;;  %v9624_v37 = vand.u32 4294901760, %v9623_v6  ;;  %v9626_v40 = vand.u32 4294901760, %v7659_v28 }
  0xc6   : > { %5986 = vmatmul.mubr.f32.gmra.mrb[18].mxu1 %v769_v26  ;;  %v798_v26 = vsub.f32 %v9619_v51, %v9620_v39  ;;  %v7911_v51 = vand.u32 4294901760, %v2307_v42 }
  0xc7   : > { %6243 = vmatmul.mubr.f32.gmra.mrb[16].mxu0 %v7573_v12  ;;  %v789_v38 = vand.u32 4294901760, %v788_v30  ;;  %5988 = vmatprep.mubr.f32.mxu1 %v779_v61  ;;  %v808_v9 = vsub.f32 %v9623_v6, %v9624_v37  ;;  %v346_v61 = vld [vmem:[%s7863_s14 + $0x18] sm:$0xff]  ;;  %v7919_v37 = vsub.f32 %v2304_v0, %v7902_v23 }
  0xc8   : > { %6245 = vmatprep.mubr.f32.mxu0 %v7581_v15  ;;  %v799_v30 = vand.u32 4294901760, %v798_v26  ;;  %9625 = vst [vmem:[#allocation48_spill] sm:$0xff] %v7911_v51  ;;  %v2310_v6 = vsel %vm411_vm0, %v346_v61, 0  ;;  %v9628_v26 = vand.u32 4294901760, %v7671_v45  ;;  %v7930_v0 = vsub.f32 %v2307_v42, %v7911_v51  ;;  %v349_v61 = vld [vmem:[%s7863_s14 + $0x30] sm:$0xff] }
  0xc9   : > { %v809_v39 = vand.u32 4294901760, %v808_v9  ;;  %9627 = vst [vmem:[#allocation49_spill] sm:$0xff] %v7919_v37  ;;  %v7932_v17 = vand.u32 4294901760, %v2310_v6  ;;  %v9633_v42 = vand.u32 4294901760, %v7690_v53  ;;  %v9639_v49 = vand.u32 4294901760, %v7919_v37 }
  0xca   : > { %5989 = vmatmul.mubr.f32.gmra.mrb[20].mxu1 %v789_v38  ;;  %v818_v38 = vsub.f32 %v7659_v28, %v9626_v40  ;;  %v828_v9 = vsub.f32 %v7671_v45, %v9628_v26  ;;  %v2313_v40 = vsel %vm411_vm0, %v347_v48, 0  ;;  %9629 = vst [vmem:[#allocation50_spill] sm:$0xff] %v7930_v0  ;;  %v9632_v45 = vand.u32 4294901760, %v7900_v1  ;;  %v9641_v48 = vld [vmem:[#allocation34_spill] sm:$0xff] }
  0xcb   : > { %6246 = vmatmul.mubr.f32.gmra.mrb[18].mxu0 %v7593_v27  ;;  %5991 = vmatprep.mubr.f32.mxu1 %v799_v30  ;;  %9630 = vst [vmem:[#allocation51_spill] sm:$0xff] %v7932_v17  ;;  %v848_v2 = vsub.f32 %v7690_v53, %v9633_v42  ;;  %v9637_v42 = vld [vmem:[#allocation39_spill] sm:$0xff] }
  0xcc   : > { %6248 = vmatprep.mubr.f32.mxu0 %v7601_v62  ;;  %v819_v30 = vand.u32 4294901760, %v818_v38  ;;  %v829_v28 = vand.u32 4294901760, %v828_v9  ;;  %v7941_v38 = vsub.f32 %v7900_v1, %v9632_v45  ;;  %v2316_v9 = vsel %vm411_vm0, %v348_v10, 0  ;;  %v350_v45 = vld [vmem:[%s7863_s14 + $0x38] sm:$0xff] }
  0xcd   : > { %v849_v1 = vand.u32 4294901760, %v848_v2  ;;  %v7956_v10 = vsub.f32 %v2310_v6, %v7932_v17  ;;  %v9638_v53 = vand.u32 4294901760, %v9637_v42  ;;  %v9640_v2 = vand.u32 4294901760, %v7707_v13 }
  0xce   : > { %5992 = vmatmul.mubr.f32.gmra.mrb[22].mxu1 %v809_v39  ;;  %v9631_v39 = vand.u32 4294901760, %v7679_v63 }
  0xcf   : > { %6249 = vmatmul.mubr.f32.gmra.mrb[20].mxu0 %v7613_v54  ;;  %5994 = vmatprep.mubr.f32.mxu1 %v819_v30  ;;  %v7949_v30 = vand.u32 4294901760, %v2313_v40  ;;  %9635 = vst [vmem:[#allocation53_spill] sm:$0xff] %v7956_v10  ;;  %v858_v56 = vsub.f32 %v9637_v42, %v9638_v53  ;;  %v868_v6 = vsub.f32 %v7707_v13, %v9640_v2  ;;  %v9646_v2 = vld [vmem:[#allocation7_spill] sm:$0xff] }
  0xd0   : > { %6251 = vmatprep.mubr.f32.mxu0 %v7621_v8  ;;  %v838_v26 = vsub.f32 %v7679_v63, %v9631_v39  ;;  %v2319_v63 = vsel %vm411_vm0, %v349_v61, 0  ;;  %v7968_v61 = vsub.f32 %v7919_v37, %v9639_v49  ;;  %v2325_v49 = vsel %vm411_vm0, %v351_v59, 0  ;;  %v9644_v37 = vld [vmem:[#allocation6_spill] sm:$0xff]  ;;  %v353_v59 = vld [vmem:[%s7863_s14 + $0x50] sm:$0xff] }
  0xd1   : > { %9634 = vst [vmem:[#allocation52_spill] sm:$0xff] %v7949_v30  ;;  %v7977_v53 = vand.u32 4294901760, %v2319_v63  ;;  %v859_v42 = vand.u32 4294901760, %v858_v56  ;;  %v9645_v41 = vand.u32 4294901760, %v9644_v37  ;;  %v9647_v13 = vand.u32 4294901760, %v9646_v2 }
  0xd2   : > { %5995 = vmatmul.mubr.f32.gmra.mrb[24].mxu1 %v829_v28  ;;  %v839_v39 = vand.u32 4294901760, %v838_v26  ;;  %v7958_v28 = vand.u32 4294901760, %v2316_v9  ;;  %v2467_v26 = vand.u32 4294901760, %v7941_v38  ;;  %v2322_v38 = vsel %vm411_vm0, %v350_v45, 0 }
  0xd3   : > { %6252 = vmatmul.mubr.f32.gmra.mrb[22].mxu0 %v7633_v36  ;;  %9642 = vst [vmem:[#allocation34_spill] sm:$0xff] %v7977_v53  ;;  %v899_v17 = vsub.f32 %v9644_v37, %v9645_v41  ;;  %v906_v33 = vsub.f32 %v9646_v2, %v9647_v13  ;;  %v8000_v31 = vand.u32 4294901760, %v2322_v38  ;;  %v9652_v13 = vld [vmem:[#allocation42_spill] sm:$0xff] }
  0xd4   : > { %6254 = vmatprep.mubr.f32.mxu0 %v7641_v16  ;;  %9636 = vst [vmem:[#allocation54_spill] sm:$0xff] %v7958_v28  ;;  %5997 = vmatprep.mubr.f32.mxu1 %v839_v39  ;;  %v7975_v39 = vsub.f32 %v2313_v40, %v7949_v30  ;;  %v9648_v40 = vand.u32 4294901760, %v7930_v0  ;;  %v7993_v56 = vsub.f32 %v2316_v9, %v7958_v28  ;;  %v9653_v23 = vand.u32 4294901760, %v9652_v13 }
  0xd5   : > { %9651 = vst [vmem:[#allocation36_spill] sm:$0xff] %v8000_v31  ;;  %v907_v45 = vand.u32 4294901760, %v906_v33  ;;  %v8010_v28 = vand.u32 4294901760, %v2325_v49 }
  0xd6   : > { %5998 = vmatmul.mubr.f32.gmra.mrb[26].mxu1 %v849_v1  ;;  %v869_v1 = vand.u32 4294901760, %v868_v6  ;;  %v2486_v30 = vsub.f32 %v7930_v0, %v9648_v40  ;;  %v9649_v6 = vld [vmem:[#allocation41_spill] sm:$0xff]  ;;  %v888_v40 = vsub.f32 %v9652_v13, %v9653_v23  ;;  %v900_v0 = vand.u32 4294901760, %v899_v17 }
  0xd7   : > { %6255 = vmatmul.mubr.f32.gmra.mrb[24].mxu0 %v7653_v22  ;;  %6000 = vmatprep.mubr.f32.mxu1 %v859_v42  ;;  %v9650_v51 = vand.u32 4294901760, %v9649_v6  ;;  %v8008_v42 = vsub.f32 %v2319_v63, %v7977_v53  ;;  %v354_v23 = vld [vmem:[%s7863_s14 + $0x58] sm:$0xff]  ;;  %v9656_v13 = vand.u32 4294901760, %v7956_v10  ;;  %v8021_v53 = vsub.f32 %v2322_v38, %v8000_v31  ;;  %v356_v63 = vld [vmem:[%s7863_s14 + $0x68] sm:$0xff] }
  0xd8   : > { %6257 = vmatprep.mubr.f32.mxu0 %v7661_v55  ;;  %v889_v17 = vand.u32 4294901760, %v888_v40  ;;  %v6582_v33 = vpack.c.bf16 %v907_v45, %v900_v0  ;;  %v9658_v38 = vand.u32 4294901760, %v7975_v39 }
  0xd9   : > { %v878_v41 = vsub.f32 %v9649_v6, %v9650_v51  ;;  %9655 = vst [vmem:[#allocation6_spill] sm:$0xff] %v8008_v42  ;;  %v2331_v6 = vsel %vm411_vm0, %v353_v59, 0  ;;  %v2496_v9 = vsub.f32 %v7956_v10, %v9656_v13  ;;  %9657 = vst [vmem:[#allocation7_spill] sm:$0xff] %v8021_v53  ;;  %v2334_v59 = vsel %vm411_vm0, %v354_v23, 0 }
  0xda   : > { %6001 = vmatmul.mubr.f32.gmra.mrb[28].mxu1 %v869_v1  ;;  %v2328_v1 = vsel %vm411_vm0, %v352_v5, 0  ;;  %6583 = vmatprep.subr.bf16.mxu1 %v6582_v33  ;;  %v2477_v5 = vand.u32 4294901760, %v7968_v61  ;;  %v8028_v45 = vand.u32 4294901760, %v2331_v6  ;;  %v2487_v13 = vand.u32 4294901760, %v2486_v30  ;;  %v357_v61 = vld [vmem:[%s7863_s14 + $0x70] sm:$0xff] }
  0xdb   : > { %6258 = vmatmul.mubr.f32.gmra.mrb[26].mxu0 %v9641_v48  ;;  %v879_v51 = vand.u32 4294901760, %v878_v41  ;;  %v355_v41 = vld [vmem:[%s7863_s14 + $0x60] sm:$0xff]  ;;  %v8026_v0 = vand.u32 4294901760, %v2328_v1  ;;  %6585 = vmatpush3.bf16.msra.mxu1 %v6582_v33  ;;  %v2506_v40 = vsub.f32 %v7975_v39, %v9658_v38  ;;  %v2497_v31 = vand.u32 4294901760, %v2496_v9 }
  0xdc   : > { %6260 = vmatprep.mubr.f32.mxu0 %v9643_v46  ;;  %v2337_v10 = vsel %vm411_vm0, %v355_v41, 0  ;;  %v9660_v23 = vand.u32 4294901760, %v7993_v56  ;;  %v8046_v33 = vand.u32 4294901760, %v2334_v59  ;;  %v2340_v9 = vsel %vm411_vm0, %v356_v63, 0 }
  0xdd   : > { %6003 = vmatprep.mubr.f32.mxu1 %v879_v51  ;;  %v9438_v51 = vand.u32 4294901760, %v8008_v42  ;;  %v2343_v41 = vsel %vm411_vm0, %v357_v61, 0  ;;  %v2507_v38 = vand.u32 4294901760, %v2506_v40 }
  0xde   : > { %6004 = vmatmul.mubr.f32.gmra.mrb[30].mxu1 %v889_v17  ;;  %v8036_v17 = vsub.f32 %v2325_v49, %v8010_v28  ;;  %v2516_v30 = vsub.f32 %v7993_v56, %v9660_v23  ;;  %v8050_v49 = vsub.f32 %v2328_v1, %v8026_v0  ;;  %v8068_v61 = vsub.f32 %v2334_v59, %v8046_v33 }
  0xdf   : > { %6261 = vmatmul.mubr.f32.gmra.mrb[28].mxu0 %v9654_v29  ;;  %6010 = vmatprep.mubr.f32.mxu1 %v7421_v19  ;;  %v8053_v19 = vsub.f32 %v2331_v6, %v8028_v45  ;;  %v358_v6 = vld [vmem:[%s7863_s14 + $0x78] sm:$0xff] }
  0xe0   : > { %6263 = vmatprep.mubr.f32.mxu0 %v7700_v7  ;;  %9659 = vst [vmem:[#allocation38_spill] sm:$0xff] %v8036_v17  ;;  %9661 = vst [vmem:[#allocation55_spill] sm:$0xff] %v8050_v49  ;;  %v9442_v1 = vand.u32 4294901760, %v8036_v17  ;;  %v2517_v63 = vand.u32 4294901760, %v2516_v30  ;;  %v2346_v59 = vsel %vm411_vm0, %v358_v6, 0  ;;  %v9667_v6 = vand.u32 4294901760, %v8050_v49 }
  0xe1   : > { %9662 = vst [vmem:[#allocation56_spill] sm:$0xff] %v8053_v19  ;;  %9663 = vst [vmem:[#allocation57_spill] sm:$0xff] %v8068_v61 }
  0xe2   : > { %6011 = vmatmul.mubr.f32.vlgmr.msra.gmra.mrb[0].mxu1 %v7423_v20  ;;  %v2526_v20 = vsub.f32 %v8008_v42, %v9438_v51 }
  0xe3   : > { %6264 = vmatmul.mubr.f32.gmra.mrb[30].mxu0 %v7709_v14  ;;  %6013 = vmatprep.mubr.f32.mxu1 %v7425_v21  ;;  %v8070_v21 = vand.u32 4294901760, %v2340_v9 }
  0xe4   : > { %6270 = vmatprep.mubr.f32.mxu0 %v2467_v26  ;;  %v9441_v26 = vand.u32 4294901760, %v8021_v53  ;;  %v2527_v51 = vand.u32 4294901760, %v2526_v20  ;;  %v361_v20 = vld [vmem:[%s7863_s14 + $0x90] sm:$0xff] }
  0xe5   : > { %v8093_v30 = vsub.f32 %v2340_v9, %v8070_v21 }
  0xe6   : > { %6014 = vmatmul.mubr.f32.gmra.mrb[2].mxu1 %v7430_v25  ;;  %v2536_v40 = vsub.f32 %v8021_v53, %v9441_v26  ;;  %v2546_v25 = vsub.f32 %v8036_v17, %v9442_v1  ;;  %v360_v26 = vld [vmem:[%s7863_s14 + $0x88] sm:$0xff]  ;;  %v9668_v1 = vand.u32 4294901760, %v8053_v19  ;;  %v9669_v53 = vand.u32 4294901760, %v8068_v61 }
  0xe7   : > { %6271 = vmatmul.mubr.f32.vlgmr.msra.gmra.mrb[0].mxu0 %v2477_v5  ;;  %v8063_v5 = vand.u32 4294901760, %v2337_v10  ;;  %6016 = vmatprep.mubr.f32.mxu1 %v7444_v32  ;;  %9665 = vst [vmem:[#allocation59_spill] sm:$0xff] %v8093_v30 }
  0xe8   : > { %6609 = vmatpush3.bf16.msra.mxu0 %v7798_v44  ;;  %6273 = vmatprep.mubr.f32.mxu0 %v2487_v13  ;;  %v8072_v44 = vand.u32 4294901760, %v2343_v41  ;;  %v359_v13 = vld [vmem:[%s7863_s14 + $0x80] sm:$0xff]  ;;  %v2566_v9 = vsub.f32 %v8053_v19, %v9668_v1  ;;  %v9673_v19 = vand.u32 4294901760, %v8093_v30 }
  0xe9   : > { %6611 = vmatprep.subr.bf16.mxu0 %v7796_v58  ;;  %v2349_v42 = vsel %vm411_vm0, %v359_v13, 0  ;;  %v2556_v13 = vsub.f32 %v8050_v49, %v9667_v6  ;;  %v2576_v6 = vsub.f32 %v8068_v61, %v9669_v53 }
  0xea   : > { %v8096_v32 = vsub.f32 %v2343_v41, %v8072_v44  ;;  %6017 = vmatmul.mubr.f32.gmra.mrb[4].mxu1 %v7449_v34  ;;  %v2547_v41 = vand.u32 4294901760, %v2546_v25  ;;  %v8110_v17 = vand.u32 4294901760, %v2349_v42  ;;  %v2352_v34 = vsel %vm411_vm0, %v360_v26, 0  ;;  %v363_v25 = vld [vmem:[%s7863_s14 + $0xa0] sm:$0xff] }
  0xeb   : > { %6274 = vmatmul.mubr.f32.gmra.mrb[2].mxu0 %v2497_v31  ;;  %v8087_v31 = vsub.f32 %v2337_v10, %v8063_v5  ;;  %v2537_v10 = vand.u32 4294901760, %v2536_v40  ;;  %6019 = vmatprep.mubr.f32.mxu1 %v7451_v35  ;;  %v362_v40 = vld [vmem:[%s7863_s14 + $0x98] sm:$0xff]  ;;  %v2557_v26 = vand.u32 4294901760, %v2556_v13  ;;  %v8125_v23 = vand.u32 4294901760, %v2352_v34 }
  0xec   : > { %6276 = vmatprep.mubr.f32.mxu0 %v2507_v38  ;;  %9666 = vst [vmem:[#allocation60_spill] sm:$0xff] %v8096_v32  ;;  %v8098_v38 = vand.u32 4294901760, %v2346_v59  ;;  %v8132_v35 = vsub.f32 %v2349_v42, %v8110_v17  ;;  %v2358_v61 = vsel %vm411_vm0, %v362_v40, 0  ;;  %v2361_v13 = vsel %vm411_vm0, %v363_v25, 0 }
  0xed   : > { %9664 = vst [vmem:[#allocation58_spill] sm:$0xff] %v8087_v31  ;;  %v9671_v53 = vand.u32 4294901760, %v8087_v31  ;;  %v8149_v40 = vsub.f32 %v2352_v34, %v8125_v23  ;;  %v8151_v25 = vand.u32 4294901760, %v2358_v61  ;;  %v367_v34 = vld [vmem:[%s7863_s14 + $0xc0] sm:$0xff] }
  0xee   : > { %6020 = vmatmul.mubr.f32.gmra.mrb[6].mxu1 %v7472_v47  ;;  %9672 = vst [vmem:[#allocation62_spill] sm:$0xff] %v8132_v35  ;;  %v364_v47 = vld [vmem:[%s7863_s14 + $0xa8] sm:$0xff] }
  0xef   : > { %6277 = vmatmul.mubr.f32.gmra.mrb[4].mxu0 %v2517_v63  ;;  %v2355_v63 = vsel %vm411_vm0, %v361_v20, 0  ;;  %v2567_v20 = vand.u32 4294901760, %v2566_v9  ;;  %6022 = vmatprep.mubr.f32.mxu1 %v7480_v50  ;;  %v2586_v1 = vsub.f32 %v8087_v31, %v9671_v53  ;;  %v2577_v9 = vand.u32 4294901760, %v2576_v6 }
  0xf0   : > { %6279 = vmatprep.mubr.f32.mxu0 %v2527_v51  ;;  %v8121_v51 = vsub.f32 %v2346_v59, %v8098_v38  ;;  %v8134_v59 = vand.u32 4294901760, %v2355_v63  ;;  %v2596_v50 = vsub.f32 %v8093_v30, %v9673_v19  ;;  %v2364_v6 = vsel %vm411_vm0, %v364_v47, 0 }
  0xf1   : > { %v2587_v19 = vand.u32 4294901760, %v2586_v1  ;;  %v8164_v49 = vand.u32 4294901760, %v2364_v6  ;;  %v9464_v1 = vand.u32 4294901760, %v8149_v40 }
  0xf2   : > { %9670 = vst [vmem:[#allocation61_spill] sm:$0xff] %v8121_v51  ;;  %6023 = vmatmul.mubr.f32.gmra.mrb[8].mxu1 %v7493_v57  ;;  %v8158_v53 = vsub.f32 %v2355_v63, %v8134_v59  ;;  %v8160_v57 = vand.u32 4294901760, %v2361_v13 }
  0xf3   : > { %6280 = vmatmul.mubr.f32.gmra.mrb[6].mxu0 %v2537_v10  ;;  %v365_v10 = vld [vmem:[%s7863_s14 + $0xb0] sm:$0xff]  ;;  %6025 = vmatprep.mubr.f32.mxu1 %v7501_v60  ;;  %v9676_v60 = vand.u32 4294901760, %v8121_v51 }
  0xf4   : > { %6282 = vmatprep.mubr.f32.mxu0 %v2547_v41  ;;  %v9674_v41 = vand.u32 4294901760, %v8096_v32  ;;  %v2367_v31 = vsel %vm411_vm0, %v365_v10, 0  ;;  %9675 = vst [vmem:[#allocation63_spill] sm:$0xff] %v8158_v53 }
  0xf5   : > { %v8166_v47 = vand.u32 4294901760, %v2367_v31  ;;  %v2616_v63 = vsub.f32 %v8121_v51, %v9676_v60  ;;  %v368_v60 = vld [vmem:[%s7863_s14 + $0xc8] sm:$0xff]  ;;  %v370_v51 = vld [vmem:[%s7863_s14 + $0xd8] sm:$0xff] }
  0xf6   : > { %v2606_v42 = vsub.f32 %v8096_v32, %v9674_v41  ;;  %v9459_v41 = vand.u32 4294901760, %v8132_v35  ;;  %v2597_v32 = vand.u32 4294901760, %v2596_v50  ;;  %6026 = vmatmul.mubr.f32.gmra.mrb[10].mxu1 %v7513_v3  ;;  %v8183_v50 = vsub.f32 %v2361_v13, %v8160_v57 }
  0xf7   : > { %6283 = vmatmul.mubr.f32.gmra.mrb[8].mxu0 %v2557_v26  ;;  %v366_v26 = vld [vmem:[%s7863_s14 + $0xb8] sm:$0xff]  ;;  %6028 = vmatprep.mubr.f32.mxu1 %v7521_v11  ;;  %v2636_v13 = vsub.f32 %v8149_v40, %v9464_v1 }
  0xf8   : > { %6285 = vmatprep.mubr.f32.mxu0 %v2567_v20  ;;  %v2607_v30 = vand.u32 4294901760, %v2606_v42  ;;  %v8174_v20 = vsub.f32 %v2358_v61, %v8151_v25  ;;  %v2370_v10 = vsel %vm411_vm0, %v366_v26, 0  ;;  %v2626_v3 = vsub.f32 %v8132_v35, %v9459_v41  ;;  %9678 = vst [vmem:[#allocation65_spill] sm:$0xff] %v8183_v50 }
  0xf9   : > { %v2373_v42 = vsel %vm411_vm0, %v367_v34, 0  ;;  %v8188_v61 = vsub.f32 %v2364_v6, %v8164_v49  ;;  %v8191_v26 = vsub.f32 %v2367_v31, %v8166_v47  ;;  %v8193_v11 = vand.u32 4294901760, %v2370_v10 }
  0xfa   : > { %9677 = vst [vmem:[#allocation64_spill] sm:$0xff] %v8174_v20  ;;  %6029 = vmatmul.mubr.f32.gmra.mrb[12].mxu1 %v7533_v18  ;;  %v2617_v41 = vand.u32 4294901760, %v2616_v63  ;;  %v8201_v6 = vand.u32 4294901760, %v2373_v42  ;;  %v2627_v31 = vand.u32 4294901760, %v2626_v3  ;;  %v9470_v18 = vand.u32 4294901760, %v8183_v50 }
  0xfb   : > { %6286 = vmatmul.mubr.f32.gmra.mrb[10].mxu0 %v2577_v9  ;;  %v9465_v9 = vand.u32 4294901760, %v8158_v53  ;;  %9679 = vst [vmem:[#allocation66_spill] sm:$0xff] %v8188_v61  ;;  %9680 = vst [vmem:[#allocation67_spill] sm:$0xff] %v8191_v26  ;;  %6031 = vmatprep.mubr.f32.mxu1 %v7541_v24  ;;  %v8214_v24 = vsub.f32 %v2370_v10, %v8193_v11  ;;  %v2637_v3 = vand.u32 4294901760, %v2636_v13  ;;  %v2382_v13 = vsel %vm411_vm0, %v370_v51, 0 }
  0xfc   : > { %6288 = vmatprep.mubr.f32.mxu0 %v2587_v19  ;;  %v369_v19 = vld [vmem:[%s7863_s14 + $0xd0] sm:$0xff]  ;;  %9681 = vst [vmem:[#allocation68_spill] sm:$0xff] %v8201_v6 }
  0xfd   : > { %v2646_v35 = vsub.f32 %v8158_v53, %v9465_v9  ;;  %v2379_v63 = vsel %vm411_vm0, %v369_v19, 0  ;;  %v9682_v9 = vand.u32 4294901760, %v8174_v20  ;;  %v8222_v19 = vsub.f32 %v2373_v42, %v8201_v6 }
  0xfe   : > { %6032 = vmatmul.mubr.f32.gmra.mrb[14].mxu1 %v7553_v43  ;;  %v2666_v43 = vsub.f32 %v8183_v50, %v9470_v18  ;;  %v9685_v42 = vand.u32 4294901760, %v8188_v61  ;;  %v9686_v53 = vand.u32 4294901760, %v8191_v26  ;;  %v8248_v50 = vand.u32 4294901760, %v2382_v13 }
  0xff   : > { %6289 = vmatmul.mubr.f32.gmra.mrb[12].mxu0 %v2597_v32  ;;  %v2376_v32 = vsel %vm411_vm0, %v368_v60, 0  ;;  %v2656_v60 = vsub.f32 %v8174_v20, %v9682_v9  ;;  %6034 = vmatprep.mubr.f32.mxu1 %v7561_v52  ;;  %v2647_v10 = vand.u32 4294901760, %v2646_v35  ;;  %v372_v9 = vld [vmem:[%s7863_s14 + $0xe8] sm:$0xff] }
 0x100   : > { %6291 = vmatprep.mubr.f32.mxu0 %v2607_v30  ;;  %v371_v30 = vld [vmem:[%s7863_s14 + $0xe0] sm:$0xff]  ;;  %v8224_v1 = vand.u32 4294901760, %v2376_v32  ;;  %v2676_v20 = vsub.f32 %v8188_v61, %v9685_v42  ;;  %v2686_v52 = vsub.f32 %v8191_v26, %v9686_v53  ;;  %9687 = vst [vmem:[#allocation71_spill] sm:$0xff] %v8248_v50  ;;  %v2667_v42 = vand.u32 4294901760, %v2666_v43 }
 0x101   : > { %v2385_v34 = vsel %vm411_vm0, %v371_v30, 0  ;;  %v2657_v18 = vand.u32 4294901760, %v2656_v60  ;;  %v374_v60 = vld [vmem:[%s7863_s14 + $0xf8] sm:$0xff]  ;;  %v8268_v43 = vsub.f32 %v2382_v13, %v8248_v50 }
 0x102   : > { %9683 = vst [vmem:[#allocation69_spill] sm:$0xff] %v8224_v1  ;;  %6035 = vmatmul.mubr.f32.gmra.mrb[16].mxu1 %v7573_v12  ;;  %v8246_v30 = vsub.f32 %v2376_v32, %v8224_v1  ;;  %v8254_v35 = vand.u32 4294901760, %v2385_v34  ;;  %v2388_v12 = vsel %vm411_vm0, %v372_v9, 0  ;;  %v2677_v51 = vand.u32 4294901760, %v2676_v20 }
 0x103   : > { %6292 = vmatmul.mubr.f32.gmra.mrb[14].mxu0 %v2617_v41  ;;  %v8230_v41 = vand.u32 4294901760, %v2379_v63  ;;  %6037 = vmatprep.mubr.f32.mxu1 %v7581_v15  ;;  %v2687_v26 = vand.u32 4294901760, %v2686_v52  ;;  %v9689_v32 = vand.u32 4294901760, %v8214_v24  ;;  %v9690_v15 = vand.u32 4294901760, %v8222_v19 }
 0x104   : > { %6294 = vmatprep.mubr.f32.mxu0 %v2627_v31  ;;  %v373_v31 = vld [vmem:[%s7863_s14 + $0xf0] sm:$0xff]  ;;  %9688 = vst [vmem:[#allocation72_spill] sm:$0xff] %v8254_v35  ;;  %v8270_v9 = vand.u32 4294901760, %v2388_v12  ;;  %v8275_v52 = vsub.f32 %v2385_v34, %v8254_v35  ;;  %s7287_s14 = smov [#allocation3]  }
 0x105   : > { %9684 = vst [vmem:[#allocation70_spill] sm:$0xff] %v8230_v41  ;;  %v8252_v53 = vsub.f32 %v2379_v63, %v8230_v41  ;;  %v2696_v61 = vsub.f32 %v8214_v24, %v9689_v32  ;;  %v2706_v63 = vsub.f32 %v8222_v19, %v9690_v15  ;;  %s7226_s15 = sshll.u32 %s7287_s14, 4  ;;  %s7227_s15 = int_to_ptr.vmem [resolvable:$false] %s7226_s15 }
 0x106   : > { %6038 = vmatmul.mubr.f32.gmra.mrb[18].mxu1 %v7593_v27  ;;  %9691 = vst [vmem:[#allocation73_spill] sm:$0xff] %v8270_v9  ;;  %s7228_s16 = scalar_lea.vmem %s7227_s15, 64  ;;  %p7229_p0 = scmp.lt.s32.totalorder %s9267_s24, %s7227_s15 }
 0x107   : > { %6295 = vmatmul.mubr.f32.gmra.mrb[16].mxu0 %v2637_v3  ;;  %v2391_v3 = vsel %vm411_vm0, %v373_v31, 0  ;;  %6040 = vmatprep.mubr.f32.mxu1 %v7601_v62  ;;  %v9482_v20 = vand.u32 4294901760, %v8252_v53  ;;  %v2697_v31 = vand.u32 4294901760, %v2696_v61  ;;  %v9481_v62 = vand.u32 4294901760, %v8268_v43  ;;  %p7230_p1 = scmp.lt.s32.totalorder %s7228_s16, %s7222_s10 }
 0x108   : > { %6297 = vmatprep.mubr.f32.mxu0 %v2647_v10  ;;  %v9483_v10 = vand.u32 4294901760, %v8246_v30  ;;  %v8277_v27 = vand.u32 4294901760, %v2391_v3  ;;  %v2707_v34 = vand.u32 4294901760, %v2706_v63  ;;  %v9480_v61 = vand.u32 4294901760, %v8275_v52 }
 0x109   : > { %p7231_p2 = por %p7230_p1, %p7229_p0 }
 0x10a   : > { %9692 = vst [vmem:[#allocation74_spill] sm:$0xff] %v8277_v27  ;;  %6041 = vmatmul.mubr.f32.gmra.mrb[20].mxu1 %v7613_v54  ;;  %v2716_v13 = vsub.f32 %v8246_v30, %v9483_v10  ;;  %v2726_v54 = vsub.f32 %v8252_v53, %v9482_v20  ;;  %v9754_v20 = vld [vmem:[#allocation64_spill] sm:$0xff]  ;;  %v9755_v10 = vld [vmem:[#allocation65_spill] sm:$0xff] }
 0x10b   : > { %6298 = vmatmul.mubr.f32.gmra.mrb[18].mxu0 %v2657_v18  ;;  %v2394_v18 = vsel %vm411_vm0, %v374_v60, 0  ;;  %6043 = vmatprep.mubr.f32.mxu1 %v7621_v8  ;;  %v2736_v60 = vsub.f32 %v8268_v43, %v9481_v62  ;;  %v9753_v62 = vld [vmem:[#allocation63_spill] sm:$0xff]  ;;  %p7232_p3 = pnand %p7231_p2, %p7225_p13 }
 0x10c   : > { %6300 = vmatprep.mubr.f32.mxu0 %v2667_v42  ;;  %v8286_v42 = vsub.f32 %v2388_v12, %v8270_v9  ;;  %v8288_v32 = vand.u32 4294901760, %v2394_v18  ;;  %v2717_v12 = vand.u32 4294901760, %v2716_v13  ;;  %v2727_v15 = vand.u32 4294901760, %v2726_v54 }
 0x10d   : > { %v2737_v63 = vand.u32 4294901760, %v2736_v60  ;;  %v9697_v60 = vld [vmem:[#allocation10_spill] sm:$0xff] }
 0x10e   : > { %9693 = vst [vmem:[#allocation75_spill] sm:$0xff] %v8288_v32  ;;  %6044 = vmatmul.mubr.f32.gmra.mrb[22].mxu1 %v7633_v36  ;;  %v9479_v8 = vand.u32 4294901760, %v8286_v42 }
 0x10f   : > { %6301 = vmatmul.mubr.f32.gmra.mrb[20].mxu0 %v2677_v51  ;;  %v8296_v51 = vsub.f32 %v2391_v3, %v8277_v27  ;;  %6046 = vmatprep.mubr.f32.mxu1 %v7641_v16  ;;  %v2746_v3 = vsub.f32 %v8275_v52, %v9480_v61  ;;  %v9752_v61 = vld [vmem:[#allocation62_spill] sm:$0xff] }
 0x110   : > { %6303 = vmatprep.mubr.f32.mxu0 %v2687_v26  ;;  %v8304_v26 = vsub.f32 %v2394_v18, %v8288_v32 }
 0x111   : > { %v9478_v36 = vand.u32 4294901760, %v8296_v51  ;;  %v2747_v16 = vand.u32 4294901760, %v2746_v3  ;;  %v9703_v3 = vld [vmem:[#allocation52_spill] sm:$0xff] }
 0x112   : > { %6047 = vmatmul.mubr.f32.gmra.mrb[24].mxu1 %v7653_v22  ;;  %v9477_v18 = vand.u32 4294901760, %v8304_v26 }
 0x113   : > { %6304 = vmatmul.mubr.f32.gmra.mrb[22].mxu0 %v2697_v31  ;;  %v2756_v31 = vsub.f32 %v8286_v42, %v9479_v8  ;;  %6049 = vmatprep.mubr.f32.mxu1 %v7661_v55  ;;  %v2766_v13 = vsub.f32 %v8296_v51, %v9478_v36  ;;  %v9750_v36 = vld [vmem:[#allocation60_spill] sm:$0xff]  ;;  %v9751_v8 = vld [vmem:[#allocation61_spill] sm:$0xff] }
 0x114   : > { %6306 = vmatprep.mubr.f32.mxu0 %v2707_v34  ;;  %v2776_v34 = vsub.f32 %v8304_v26, %v9477_v18  ;;  %v9749_v18 = vld [vmem:[#allocation59_spill] sm:$0xff] }
 0x115   : > { %v2757_v22 = vand.u32 4294901760, %v2756_v31  ;;  %v2767_v54 = vand.u32 4294901760, %v2766_v13  ;;  %v9705_v31 = vld [vmem:[#allocation54_spill] sm:$0xff] }
 0x116   : > { %6050 = vmatmul.mubr.f32.gmra.mrb[26].mxu1 %v9641_v48  ;;  %v2777_v55 = vand.u32 4294901760, %v2776_v34  ;;  %v9695_v48 = vld [vmem:[#allocation9_spill] sm:$0xff]  ;;  %v9707_v13 = vld [vmem:[#allocation34_spill] sm:$0xff]  ;;  %v9710_v34 = vld [vmem:[#allocation16_spill] sm:$0xff] }
 0x117   : > { %6307 = vmatmul.mubr.f32.gmra.mrb[24].mxu0 %v2717_v12  ;;  %6052 = vmatprep.mubr.f32.mxu1 %v9643_v46  ;;  %v6586_v12 = vpack.c.bf16 %v9646_v2, %v9644_v37  ;;  %v9694_v46 = vld [vmem:[#allocation8_spill] sm:$0xff]  ;;  %v9699_v37 = vld [vmem:[#allocation43_spill] sm:$0xff] }
 0x118   : > { %6309 = vmatprep.mubr.f32.mxu0 %v2727_v15  ;;  %v9700_v2 = vld [vmem:[#allocation11_spill] sm:$0xff]  ;;  %v9702_v15 = vld [vmem:[#allocation12_spill] sm:$0xff] }
 0x119   : > { %6587 = vmatprep.subr.bf16.mxu1 %v6586_v12 }
 0x11a   : > { %6053 = vmatmul.mubr.f32.gmra.mrb[28].mxu1 %v9654_v29  ;;  %v9696_v29 = vld [vmem:[#allocation47_spill] sm:$0xff] }
 0x11b   : > { %6310 = vmatmul.mubr.f32.gmra.mrb[26].mxu0 %v2737_v63  ;;  %6055 = vmatprep.mubr.f32.mxu1 %v7700_v7  ;;  %v9698_v7 = vld [vmem:[#allocation48_spill] sm:$0xff]  ;;  %v9704_v63 = vld [vmem:[#allocation13_spill] sm:$0xff] }
 0x11c   : > { %6312 = vmatprep.mubr.f32.mxu0 %v2747_v16  ;;  %6589 = vmatpush3.bf16.msra.mxu1 %v6586_v12  ;;  %v9706_v16 = vld [vmem:[#allocation14_spill] sm:$0xff]  ;;  %v9713_v12 = vld [vmem:[#allocation19_spill] sm:$0xff] }
 0x11e   : > { %6056 = vmatmul.mubr.f32.gmra.mrb[30].mxu1 %v7709_v14  ;;  %v9701_v14 = vld [vmem:[#allocation51_spill] sm:$0xff] }
 0x11f   : > { %6313 = vmatmul.mubr.f32.gmra.mrb[28].mxu0 %v2757_v22  ;;  %6062 = vmatprep.mubr.f32.mxu1 %v9694_v46  ;;  %v9709_v22 = vld [vmem:[#allocation36_spill] sm:$0xff] }
 0x120   : > { %6315 = vmatprep.mubr.f32.mxu0 %v2767_v54  ;;  %v9711_v54 = vld [vmem:[#allocation17_spill] sm:$0xff]  ;;  %v9714_v46 = vld [vmem:[#allocation20_spill] sm:$0xff] }
 0x122   : > { %6063 = vmatmul.mubr.f32.vlgmr.msra.gmra.mrb[0].mxu1 %v9695_v48  ;;  %v9715_v48 = vld [vmem:[#allocation21_spill] sm:$0xff] }
 0x123   : > { %6316 = vmatmul.mubr.f32.gmra.mrb[30].mxu0 %v2777_v55  ;;  %6065 = vmatprep.mubr.f32.mxu1 %v9697_v60  ;;  %v9712_v55 = vld [vmem:[#allocation18_spill] sm:$0xff] }
 0x124   : > { %6322 = vmatprep.mubr.f32.mxu0 %v7887_v4  ;;  %v9716_v60 = vld [vmem:[#allocation22_spill] sm:$0xff] }
 0x126   : > { %6066 = vmatmul.mubr.f32.gmra.mrb[2].mxu1 %v9700_v2  ;;  %v9717_v2 = vld [vmem:[#allocation23_spill] sm:$0xff] }
 0x127   : > { %6323 = vmatmul.mubr.f32.vlgmr.msra.gmra.mrb[0].mxu0 %v9696_v29  ;;  %6068 = vmatprep.mubr.f32.mxu1 %v9702_v15  ;;  %v9718_v15 = vld [vmem:[#allocation24_spill] sm:$0xff] }
 0x128   : > { %6613 = vmatpush3.bf16.msra.mxu0 %v7796_v58  ;;  %6325 = vmatprep.mubr.f32.mxu0 %v9698_v7  ;;  %v9708_v58 = vld [vmem:[#allocation15_spill] sm:$0xff] }
 0x129   : > { %6615 = vmatprep.subr.bf16.mxu0 %v9699_v37 }
 0x12a   : > { %6069 = vmatmul.mubr.f32.gmra.mrb[4].mxu1 %v9704_v63  ;;  %v9719_v63 = vld [vmem:[#allocation25_spill] sm:$0xff] }
 0x12b   : > { %6326 = vmatmul.mubr.f32.gmra.mrb[2].mxu0 %v9701_v14  ;;  %6071 = vmatprep.mubr.f32.mxu1 %v9706_v16  ;;  %v9720_v16 = vld [vmem:[#allocation26_spill] sm:$0xff] }
 0x12c   : > { %6328 = vmatprep.mubr.f32.mxu0 %v9703_v3 }
 0x12e   : > { %6072 = vmatmul.mubr.f32.gmra.mrb[6].mxu1 %v9708_v58  ;;  %v9721_v58 = vld [vmem:[#allocation27_spill] sm:$0xff] }
 0x12f   : > { %6329 = vmatmul.mubr.f32.gmra.mrb[4].mxu0 %v9705_v31  ;;  %6074 = vmatprep.mubr.f32.mxu1 %v9710_v34  ;;  %v9722_v34 = vld [vmem:[#allocation28_spill] sm:$0xff] }
 0x130   : > { %6331 = vmatprep.mubr.f32.mxu0 %v9707_v13 }
 0x132   : > { %6075 = vmatmul.mubr.f32.gmra.mrb[8].mxu1 %v9711_v54  ;;  %v9723_v54 = vld [vmem:[#allocation29_spill] sm:$0xff] }
 0x133   : > { %6332 = vmatmul.mubr.f32.gmra.mrb[6].mxu0 %v9709_v22  ;;  %6077 = vmatprep.mubr.f32.mxu1 %v9712_v55  ;;  %v9724_v55 = vld [vmem:[#allocation30_spill] sm:$0xff] }
 0x134   : > { %6334 = vmatprep.mubr.f32.mxu0 %v8010_v28 }
 0x136   : > { %6078 = vmatmul.mubr.f32.gmra.mrb[10].mxu1 %v9713_v12  ;;  %v9725_v12 = vld [vmem:[#allocation31_spill] sm:$0xff] }
 0x137   : > { %6335 = vmatmul.mubr.f32.gmra.mrb[8].mxu0 %v8026_v0  ;;  %6080 = vmatprep.mubr.f32.mxu1 %v9714_v46  ;;  %v9726_v46 = vld [vmem:[#allocation32_spill] sm:$0xff] }
 0x138   : > { %6337 = vmatprep.mubr.f32.mxu0 %v8028_v45 }
 0x13a   : > { %6081 = vmatmul.mubr.f32.gmra.mrb[12].mxu1 %v9715_v48  ;;  %v9727_v48 = vld [vmem:[#allocation33_spill] sm:$0xff] }
 0x13b   : > { %6338 = vmatmul.mubr.f32.gmra.mrb[10].mxu0 %v8046_v33  ;;  %6083 = vmatprep.mubr.f32.mxu1 %v9716_v60  ;;  %v9728_v60 = vld [vmem:[#allocation35_spill] sm:$0xff] }
 0x13c   : > { %6340 = vmatprep.mubr.f32.mxu0 %v8063_v5 }
 0x13e   : > { %6084 = vmatmul.mubr.f32.gmra.mrb[14].mxu1 %v9717_v2  ;;  %v9729_v2 = vld [vmem:[#allocation37_spill] sm:$0xff] }
 0x13f   : > { %6341 = vmatmul.mubr.f32.gmra.mrb[12].mxu0 %v8070_v21  ;;  %6086 = vmatprep.mubr.f32.mxu1 %v9718_v15  ;;  %v9730_v15 = vld [vmem:[#allocation39_spill] sm:$0xff] }
 0x140   : > { %6343 = vmatprep.mubr.f32.mxu0 %v8072_v44 }
 0x142   : > { %6087 = vmatmul.mubr.f32.gmra.mrb[16].mxu1 %v9719_v63  ;;  %v9731_v63 = vld [vmem:[#allocation40_spill] sm:$0xff] }
 0x143   : > { %6344 = vmatmul.mubr.f32.gmra.mrb[14].mxu0 %v8098_v38  ;;  %6089 = vmatprep.mubr.f32.mxu1 %v9720_v16  ;;  %v9732_v16 = vld [vmem:[#allocation41_spill] sm:$0xff] }
 0x144   : > { %6346 = vmatprep.mubr.f32.mxu0 %v8110_v17 }
 0x146   : > { %6090 = vmatmul.mubr.f32.gmra.mrb[18].mxu1 %v9721_v58  ;;  %v9733_v58 = vld [vmem:[#allocation42_spill] sm:$0xff] }
 0x147   : > { %6347 = vmatmul.mubr.f32.gmra.mrb[16].mxu0 %v8125_v23  ;;  %6092 = vmatprep.mubr.f32.mxu1 %v9722_v34  ;;  %v9734_v34 = vld [vmem:[#allocation46_spill] sm:$0xff] }
 0x148   : > { %6349 = vmatprep.mubr.f32.mxu0 %v8134_v59 }
 0x14a   : > { %6093 = vmatmul.mubr.f32.gmra.mrb[20].mxu1 %v9723_v54  ;;  %v9735_v54 = vld [vmem:[#allocation44_spill] sm:$0xff] }
 0x14b   : > { %6350 = vmatmul.mubr.f32.gmra.mrb[18].mxu0 %v8151_v25  ;;  %6095 = vmatprep.mubr.f32.mxu1 %v9724_v55  ;;  %v9736_v55 = vand.u32 4294901760, %v9735_v54  ;;  %v9745_v54 = vld [vmem:[#allocation55_spill] sm:$0xff] }
 0x14c   : > { %6352 = vmatprep.mubr.f32.mxu0 %v8160_v57 }
 0x14e   : > { %6096 = vmatmul.mubr.f32.gmra.mrb[22].mxu1 %v9725_v12  ;;  %v9737_v12 = vld [vmem:[#allocation45_spill] sm:$0xff] }
 0x14f   : > { %6353 = vmatmul.mubr.f32.gmra.mrb[20].mxu0 %v8164_v49  ;;  %6098 = vmatprep.mubr.f32.mxu1 %v9726_v46  ;;  %v9738_v46 = vand.u32 4294901760, %v9737_v12  ;;  %v9747_v12 = vld [vmem:[#allocation57_spill] sm:$0xff] }
 0x150   : > { %6355 = vmatprep.mubr.f32.mxu0 %v8166_v47 }
 0x152   : > { %6099 = vmatmul.mubr.f32.gmra.mrb[24].mxu1 %v9727_v48  ;;  %v6618_v48 = vpack.c.bf16 %v9738_v46, %v9736_v55  ;;  %v9746_v55 = vld [vmem:[#allocation56_spill] sm:$0xff]  ;;  %v9748_v46 = vld [vmem:[#allocation58_spill] sm:$0xff] }
 0x153   : > { %6356 = vmatmul.mubr.f32.gmra.mrb[22].mxu0 %v8193_v11  ;;  %6101 = vmatprep.mubr.f32.mxu1 %v9728_v60  ;;  %v9739_v60 = vld [vmem:[#allocation49_spill] sm:$0xff] }
 0x154   : > { %6358 = vmatprep.mubr.f32.mxu0 %v8201_v6  ;;  %v9763_v6 = vand.u32 4294901760, %v7993_v56 }
 0x156   : > { %6102 = vmatmul.mubr.f32.gmra.mrb[26].mxu1 %v9729_v2  ;;  %v9740_v2 = vld [vmem:[#allocation50_spill] sm:$0xff] }
 0x157   : > { %6359 = vmatmul.mubr.f32.gmra.mrb[24].mxu0 %v8224_v1  ;;  %6104 = vmatprep.mubr.f32.mxu1 %v9730_v15  ;;  %v9741_v15 = vld [vmem:[#allocation53_spill] sm:$0xff]  ;;  %v9762_v1 = vand.u32 4294901760, %v7975_v39 }
 0x158   : > { %6361 = vmatprep.mubr.f32.mxu0 %v8230_v41  ;;  %v9761_v41 = vand.u32 4294901760, %v9741_v15 }
 0x15a   : > { %6105 = vmatmul.mubr.f32.gmra.mrb[28].mxu1 %v9731_v63  ;;  %v9742_v63 = vld [vmem:[#allocation6_spill] sm:$0xff] }
 0x15b   : > { %6362 = vmatmul.mubr.f32.gmra.mrb[26].mxu0 %v8248_v50  ;;  %6107 = vmatprep.mubr.f32.mxu1 %v9732_v16  ;;  %v9743_v16 = vld [vmem:[#allocation7_spill] sm:$0xff]  ;;  %v9760_v50 = vand.u32 4294901760, %v9740_v2 }
 0x15c   : > { %6364 = vmatprep.mubr.f32.mxu0 %v8254_v35  ;;  %v9759_v35 = vand.u32 4294901760, %v9739_v60 }
 0x15e   : > { %6108 = vmatmul.mubr.f32.gmra.mrb[30].mxu1 %v9733_v58  ;;  %v9744_v58 = vld [vmem:[#allocation38_spill] sm:$0xff] }
 0x15f   : > { %6365 = vmatmul.mubr.f32.gmra.mrb[28].mxu0 %v8270_v9  ;;  %v9758_v9 = vand.u32 4294901760, %v9734_v34 }
 0x160   : > { %6367 = vmatprep.mubr.f32.mxu0 %v8277_v27  ;;  %v9757_v27 = vld [vmem:[#allocation67_spill] sm:$0xff] }
 0x163   : > { %6368 = vmatmul.mubr.f32.gmra.mrb[30].mxu0 %v8288_v32  ;;  %v9756_v32 = vld [vmem:[#allocation66_spill] sm:$0xff] }
 0x164   : > { %6374 = vmatprep.mubr.f32.mxu0 %v9734_v34  ;;  %v9766_v34 = vand.u32 4294901760, %v9744_v58 }
 0x167   : > { %6375 = vmatmul.mubr.f32.vlgmr.msra.gmra.mrb[0].mxu0 %v9739_v60  ;;  %v9774_v60 = vand.u32 4294901760, %v9752_v61 }
 0x168   : > { %6617 = vmatpush3.bf16.msra.mxu0 %v9699_v37  ;;  %6377 = vmatprep.mubr.f32.mxu0 %v9740_v2  ;;  %v9775_v2 = vand.u32 4294901760, %v8149_v40 }
 0x169   : > { %6619 = vmatprep.subr.bf16.mxu0 %v6618_v48 }
 0x16b   : > { %6378 = vmatmul.mubr.f32.gmra.mrb[2].mxu0 %v9741_v15  ;;  %v9776_v15 = vand.u32 4294901760, %v9753_v62 }
 0x16c   : > { %6380 = vmatprep.mubr.f32.mxu0 %v7975_v39  ;;  %v9769_v39 = vand.u32 4294901760, %v9747_v12 }
 0x16f   : > { %6381 = vmatmul.mubr.f32.gmra.mrb[4].mxu0 %v7993_v56  ;;  %v9770_v56 = vand.u32 4294901760, %v9748_v46 }
 0x170   : > { %6383 = vmatprep.mubr.f32.mxu0 %v9742_v63 }
 0x173   : > { %6384 = vmatmul.mubr.f32.gmra.mrb[6].mxu0 %v9743_v16 }
 0x174   : > { %6386 = vmatprep.mubr.f32.mxu0 %v9744_v58 }
 0x177   : > { %6387 = vmatmul.mubr.f32.gmra.mrb[8].mxu0 %v9745_v54 }
 0x178   : > { %6389 = vmatprep.mubr.f32.mxu0 %v9746_v55 }
 0x17b   : > { %6390 = vmatmul.mubr.f32.gmra.mrb[10].mxu0 %v9747_v12 }
 0x17c   : > { %6392 = vmatprep.mubr.f32.mxu0 %v9748_v46 }
 0x17f   : > { %6393 = vmatmul.mubr.f32.gmra.mrb[12].mxu0 %v9749_v18 }
 0x180   : > { %6395 = vmatprep.mubr.f32.mxu0 %v9750_v36 }
 0x183   : > { %6396 = vmatmul.mubr.f32.gmra.mrb[14].mxu0 %v9751_v8 }
 0x184   : > { %6398 = vmatprep.mubr.f32.mxu0 %v9752_v61  ;;  %v9781_v61 = vand.u32 4294901760, %v8214_v24 }
 0x187   : > { %6399 = vmatmul.mubr.f32.gmra.mrb[16].mxu0 %v8149_v40  ;;  %v9782_v40 = vand.u32 4294901760, %v8222_v19 }
 0x188   : > { %6401 = vmatprep.mubr.f32.mxu0 %v9753_v62  ;;  %v9783_v62 = vand.u32 4294901760, %v8246_v30 }
 0x18b   : > { %6402 = vmatmul.mubr.f32.gmra.mrb[18].mxu0 %v9754_v20 }
 0x18c   : > { %6404 = vmatprep.mubr.f32.mxu0 %v9755_v10 }
 0x18f   : > { %6405 = vmatmul.mubr.f32.gmra.mrb[20].mxu0 %v9756_v32 }
 0x190   : > { %6407 = vmatprep.mubr.f32.mxu0 %v9757_v27 }
 0x193   : > { %6408 = vmatmul.mubr.f32.gmra.mrb[22].mxu0 %v8214_v24  ;;  %v9788_v24 = vand.u32 4294901760, %v8296_v51 }
 0x194   : > { %6410 = vmatprep.mubr.f32.mxu0 %v8222_v19  ;;  %v9789_v19 = vand.u32 4294901760, %v8304_v26 }
 0x197   : > { %6411 = vmatmul.mubr.f32.gmra.mrb[24].mxu0 %v8246_v30 }
 0x198   : > { %6413 = vmatprep.mubr.f32.mxu0 %v8252_v53 }
 0x19b   : > { %6414 = vmatmul.mubr.f32.gmra.mrb[26].mxu0 %v8268_v43 }
 0x19c   : > { %6416 = vmatprep.mubr.f32.mxu0 %v8275_v52 }
 0x19f   : > { %6417 = vmatmul.mubr.f32.gmra.mrb[28].mxu0 %v8286_v42 }
 0x1a0   : > { %6419 = vmatprep.mubr.f32.mxu0 %v8296_v51 }
 0x1a3   : > { %6420 = vmatmul.mubr.f32.gmra.mrb[30].mxu0 %v8304_v26 }
 0x1a4   : > { %6426 = vmatprep.mubr.f32.mxu0 %v9758_v9  ;;  %v9764_v9 = vand.u32 4294901760, %v9742_v63  ;;  %v9777_v63 = vand.u32 4294901760, %v9754_v20  ;;  %v9784_v20 = vand.u32 4294901760, %v8252_v53 }
 0x1a7   : > { %6427 = vmatmul.mubr.f32.vlgmr.msra.gmra.mrb[0].mxu0 %v9759_v35  ;;  %v9765_v35 = vand.u32 4294901760, %v9743_v16 }
 0x1a8   : > { %6621 = vmatpush3.bf16.msra.mxu0 %v6618_v48  ;;  %6429 = vmatprep.mubr.f32.mxu0 %v9760_v50  ;;  %v9767_v50 = vand.u32 4294901760, %v9745_v54  ;;  %v9773_v48 = vand.u32 4294901760, %v9751_v8  ;;  %v9780_v8 = vand.u32 4294901760, %v9757_v27  ;;  %v9787_v27 = vand.u32 4294901760, %v8286_v42 }
 0x1a9   : > { %6623 = vmatprep.subr.bf16.mxu0 %v9699_v37 }
 0x1ab   : > { %6430 = vmatmul.mubr.f32.gmra.mrb[2].mxu0 %v9761_v41  ;;  %v9768_v41 = vand.u32 4294901760, %v9746_v55 }
 0x1ac   : > { %6432 = vmatprep.mubr.f32.mxu0 %v9762_v1  ;;  %v9771_v1 = vand.u32 4294901760, %v9749_v18  ;;  %v9778_v18 = vand.u32 4294901760, %v9755_v10  ;;  %v9785_v10 = vand.u32 4294901760, %v8268_v43 }
 0x1af   : > { %6433 = vmatmul.mubr.f32.gmra.mrb[4].mxu0 %v9763_v6  ;;  %v9772_v6 = vand.u32 4294901760, %v9750_v36  ;;  %v9779_v36 = vand.u32 4294901760, %v9756_v32  ;;  %v9786_v32 = vand.u32 4294901760, %v8275_v52 }
 0x1b0   : > { %6435 = vmatprep.mubr.f32.mxu0 %v9764_v9  ;;  %v9790_v9 = vld [vmem:[#allocation68_spill] sm:$0xff] }
 0x1b3   : > { %6436 = vmatmul.mubr.f32.gmra.mrb[6].mxu0 %v9765_v35 }
 0x1b4   : > { %6438 = vmatprep.mubr.f32.mxu0 %v9766_v34 }
 0x1b7   : > { %6439 = vmatmul.mubr.f32.gmra.mrb[8].mxu0 %v9767_v50  ;;  %v9791_v50 = vld [vmem:[#allocation69_spill] sm:$0xff] }
 0x1b8   : > { %6441 = vmatprep.mubr.f32.mxu0 %v9768_v41  ;;  %v9792_v41 = vld [vmem:[#allocation70_spill] sm:$0xff] }
 0x1bb   : > { %6442 = vmatmul.mubr.f32.gmra.mrb[10].mxu0 %v9769_v39 }
 0x1bc   : > { %6444 = vmatprep.mubr.f32.mxu0 %v9770_v56 }
 0x1bf   : > { %6445 = vmatmul.mubr.f32.gmra.mrb[12].mxu0 %v9771_v1  ;;  %v9793_v1 = vld [vmem:[#allocation71_spill] sm:$0xff] }
 0x1c0   : > { %6447 = vmatprep.mubr.f32.mxu0 %v9772_v6  ;;  %v9794_v6 = vld [vmem:[#allocation72_spill] sm:$0xff] }
 0x1c3   : > { %6448 = vmatmul.mubr.f32.gmra.mrb[14].mxu0 %v9773_v48 }
 0x1c4   : > { %6450 = vmatprep.mubr.f32.mxu0 %v9774_v60 }
 0x1c7   : > { %6451 = vmatmul.mubr.f32.gmra.mrb[16].mxu0 %v9775_v2  ;;  %v9795_v2 = vld [vmem:[#allocation73_spill] sm:$0xff] }
 0x1c8   : > { %6453 = vmatprep.mubr.f32.mxu0 %v9776_v15  ;;  %v9796_v15 = vld [vmem:[#allocation74_spill] sm:$0xff] }
 0x1cb   : > { %6454 = vmatmul.mubr.f32.gmra.mrb[18].mxu0 %v9777_v63 }
 0x1cc   : > { %6456 = vmatprep.mubr.f32.mxu0 %v9778_v18 }
 0x1cf   : > { %6457 = vmatmul.mubr.f32.gmra.mrb[20].mxu0 %v9779_v36  ;;  %v9797_v36 = vld [vmem:[#allocation75_spill] sm:$0xff] }
 0x1d0   : > { %6459 = vmatprep.mubr.f32.mxu0 %v9780_v8 }
 0x1d3   : > { %6460 = vmatmul.mubr.f32.gmra.mrb[22].mxu0 %v9781_v61 }
 0x1d4   : > { %6462 = vmatprep.mubr.f32.mxu0 %v9782_v40 }
 0x1d7   : > { %6463 = vmatmul.mubr.f32.gmra.mrb[24].mxu0 %v9783_v62 }
 0x1d8   : > { %6465 = vmatprep.mubr.f32.mxu0 %v9784_v20 }
 0x1db   : > { %6466 = vmatmul.mubr.f32.gmra.mrb[26].mxu0 %v9785_v10 }
 0x1dc   : > { %6468 = vmatprep.mubr.f32.mxu0 %v9786_v32 }
 0x1df   : > { %6469 = vmatmul.mubr.f32.gmra.mrb[28].mxu0 %v9787_v27 }
 0x1e0   : > { %6471 = vmatprep.mubr.f32.mxu0 %v9788_v24 }
 0x1e3   : > { %6472 = vmatmul.mubr.f32.gmra.mrb[30].mxu0 %v9789_v19 }
 0x1e4   : > { %6478 = vmatprep.mubr.f32.mxu0 %v7887_v4 }
 0x1e7   : > { %6479 = vmatmul.mubr.f32.vlgmr.msra.gmra.mrb[0].mxu0 %v9696_v29 }
 0x1e8   : > { %6625 = vmatpush3.bf16.msra.mxu0 %v9699_v37  ;;  %6481 = vmatprep.mubr.f32.mxu0 %v9698_v7 }
 0x1eb   : > { %6482 = vmatmul.mubr.f32.gmra.mrb[2].mxu0 %v9701_v14 }
 0x1ec   : > { %6484 = vmatprep.mubr.f32.mxu0 %v9703_v3 }
 0x1ef   : > { %6485 = vmatmul.mubr.f32.gmra.mrb[4].mxu0 %v9705_v31 }
 0x1f0   : > { %6487 = vmatprep.mubr.f32.mxu0 %v9707_v13 }
 0x1f3   : > { %6488 = vmatmul.mubr.f32.gmra.mrb[6].mxu0 %v9709_v22 }
 0x1f4   : > { %6490 = vmatprep.mubr.f32.mxu0 %v8010_v28 }
 0x1f5   : > { %v8510_v30 = vpop.f32.mrb[0].mxu1 }
 0x1f6   : > { %v8512_v53 = vpop.f32.mrb[1].mxu1 }
 0x1f7   : > { %6491 = vmatmul.mubr.f32.gmra.mrb[8].mxu0 %v8026_v0 }
 0x1f8   : > { %6493 = vmatprep.mubr.f32.mxu0 %v8028_v45 }
 0x1f9   : > { %v8516_v43 = vpop.f32.mrb[2].mxu1 }
 0x1fa   : > { %v8518_v52 = vpop.f32.mrb[3].mxu1 }
 0x1fb   : > { %6494 = vmatmul.mubr.f32.gmra.mrb[10].mxu0 %v8046_v33 }
 0x1fc   : > { %6496 = vmatprep.mubr.f32.mxu0 %v8063_v5 }
 0x1fd   : > { %v8522_v42 = vpop.f32.mrb[4].mxu1 }
 0x1fe   : > { %v8524_v51 = vpop.f32.mrb[5].mxu1 }
 0x1ff   : > { %6497 = vmatmul.mubr.f32.gmra.mrb[12].mxu0 %v8070_v21 }
 0x200   : > { %6499 = vmatprep.mubr.f32.mxu0 %v8072_v44 }
 0x201   : > { %v8528_v26 = vpop.f32.mrb[6].mxu1 }
 0x202   : > { %v8530_v37 = vpop.f32.mrb[7].mxu1 }
 0x203   : > { %6500 = vmatmul.mubr.f32.gmra.mrb[14].mxu0 %v8098_v38 }
 0x204   : > { %6502 = vmatprep.mubr.f32.mxu0 %v8110_v17 }
 0x205   : > { %v8534_v16 = vpop.f32.mrb[8].mxu1 }
 0x206   : > { %v8536_v58 = vpop.f32.mrb[9].mxu1 }
 0x207   : > { %6503 = vmatmul.mubr.f32.gmra.mrb[16].mxu0 %v8125_v23 }
 0x208   : > { %6505 = vmatprep.mubr.f32.mxu0 %v8134_v59 }
 0x209   : > { %v8540_v54 = vpop.f32.mrb[10].mxu1 }
 0x20a   : > { %v8542_v55 = vpop.f32.mrb[11].mxu1 }
 0x20b   : > { %6506 = vmatmul.mubr.f32.gmra.mrb[18].mxu0 %v8151_v25 }
 0x20c   : > { %6508 = vmatprep.mubr.f32.mxu0 %v8160_v57 }
 0x20d   : > { %v8546_v12 = vpop.f32.mrb[12].mxu1 }
 0x20e   : > { %v8548_v46 = vpop.f32.mrb[13].mxu1 }
 0x20f   : > { %6509 = vmatmul.mubr.f32.gmra.mrb[20].mxu0 %v8164_v49 }
 0x210   : > { %6511 = vmatprep.mubr.f32.mxu0 %v8166_v47 }
 0x211   : > { %v8552_v35 = vpop.f32.mrb[14].mxu1 }
 0x212   : > { %v8554_v34 = vpop.f32.mrb[15].mxu1 }
 0x213   : > { %6512 = vmatmul.mubr.f32.gmra.mrb[22].mxu0 %v8193_v11 }
 0x214   : > { %6514 = vmatprep.mubr.f32.mxu0 %v9790_v9 }
 0x215   : > { %v8558_v39 = vpop.f32.mrb[16].mxu1 }
 0x216   : > { %v8560_v56 = vpop.f32.mrb[17].mxu1 }
 0x217   : > { %6515 = vmatmul.mubr.f32.gmra.mrb[24].mxu0 %v9791_v50 }
 0x218   : > { %6517 = vmatprep.mubr.f32.mxu0 %v9792_v41 }
 0x219   : > { %v8564_v48 = vpop.f32.mrb[18].mxu1 }
 0x21a   : > { %v8566_v60 = vpop.f32.mrb[19].mxu1 }
 0x21b   : > { %6518 = vmatmul.mubr.f32.gmra.mrb[26].mxu0 %v9793_v1 }
 0x21c   : > { %6520 = vmatprep.mubr.f32.mxu0 %v9794_v6 }
 0x21d   : > { %v8570_v63 = vpop.f32.mrb[20].mxu1 }
 0x21e   : > { %v8572_v18 = vpop.f32.mrb[21].mxu1 }
 0x21f   : > { %6521 = vmatmul.mubr.f32.gmra.mrb[28].mxu0 %v9795_v2 }
 0x220   : > { %6523 = vmatprep.mubr.f32.mxu0 %v9796_v15 }
 0x221   : > { %v8576_v8 = vpop.f32.mrb[22].mxu1 }
 0x222   : > { %v8578_v61 = vpop.f32.mrb[23].mxu1 }
 0x223   : > { %6524 = vmatmul.mubr.f32.gmra.mrb[30].mxu0 %v9797_v36 }
 0x224   : > { %6530 = vmatprep.mubr.f32.mxu0 %v7887_v4 }
 0x225   : > { %v8582_v40 = vpop.f32.mrb[24].mxu1 }
 0x226   : > { %v8584_v62 = vpop.f32.mrb[25].mxu1 }
 0x227   : > { %6531 = vmatmul.mubr.f32.vlgmr.msra.gmra.mrb[0].mxu0 %v9696_v29 }
 0x228   : > { %6533 = vmatprep.mubr.f32.mxu0 %v9698_v7 }
 0x229   : > { %v8588_v20 = vpop.f32.mrb[26].mxu1 }
 0x22a   : > { %v8590_v10 = vpop.f32.mrb[27].mxu1 }
 0x22b   : > { %6534 = vmatmul.mubr.f32.gmra.mrb[2].mxu0 %v9701_v14 }
 0x22c   : > { %6536 = vmatprep.mubr.f32.mxu0 %v9703_v3 }
 0x22d   : > { %v8594_v4 = vpop.f32.mrb[28].mxu1 }
 0x22e   : > { %v8596_v29 = vpop.f32.mrb[29].mxu1 }
 0x22f   : > { %6537 = vmatmul.mubr.f32.gmra.mrb[4].mxu0 %v9705_v31 }
 0x230   : > { %6539 = vmatprep.mubr.f32.mxu0 %v9707_v13 }
 0x231   : > { %v8600_v7 = vpop.f32.mrb[30].mxu1 }
 0x232   : > { %v8602_v14 = vpop.f32.mrb[31].mxu1 }
 0x233   : > { %6540 = vmatmul.mubr.f32.gmra.mrb[6].mxu0 %v9709_v22 }
 0x234   : > { %6542 = vmatprep.mubr.f32.mxu0 %v8010_v28  ;;  %v4259_v28 = vld [vmem:[%s9312_s5] sm:$0x1] }
 0x237   : > { %6543 = vmatmul.mubr.f32.gmra.mrb[8].mxu0 %v8026_v0  ;;  %v4264_v0 = vsel %vm4262_vm1, %v4259_v28, 0 }
 0x238   : > { %6545 = vmatprep.mubr.f32.mxu0 %v8028_v45  ;;  %v8631_v45 = vand.u32 4294901760, %v4264_v0 }
 0x23b   : > { %6546 = vmatmul.mubr.f32.gmra.mrb[10].mxu0 %v8046_v33 }
 0x23c   : > { %6548 = vmatprep.mubr.f32.mxu0 %v8063_v5 }
 0x23f   : > { %6549 = vmatmul.mubr.f32.gmra.mrb[12].mxu0 %v8070_v21 }
 0x240   : > { %6551 = vmatprep.mubr.f32.mxu0 %v8072_v44  ;;  %v8647_v44 = vld [vmem:[%s9311_s4] ss:$0 sm:$0xff] }
 0x243   : > { %6552 = vmatmul.mubr.f32.gmra.mrb[14].mxu0 %v8098_v38 }
 0x244   : > { %6554 = vmatprep.mubr.f32.mxu0 %v8110_v17  ;;  %v8634_v17 = vsub.f32 %v4264_v0, %v8631_v45 }
 0x246   : > { %9798 = vst [vmem:[#allocation8_spill] sm:$0xff] %v8634_v17  ;;  %v8637_v33 = vand.u32 4294901760, %v8634_v17 }
 0x247   : > { %6555 = vmatmul.mubr.f32.gmra.mrb[16].mxu0 %v8125_v23 }
 0x248   : > { %6557 = vmatprep.mubr.f32.mxu0 %v8134_v59  ;;  %9799 = vst [vmem:[#allocation9_spill] sm:$0xff] %v8637_v33 }
 0x24b   : > { %6558 = vmatmul.mubr.f32.gmra.mrb[18].mxu0 %v8151_v25 }
 0x24c   : > { %6560 = vmatprep.mubr.f32.mxu0 %v8160_v57 }
 0x24f   : > { %6561 = vmatmul.mubr.f32.gmra.mrb[20].mxu0 %v8164_v49  ;;  %v4462_v49 = vsub.f32 %v8634_v17, %v8637_v33 }
 0x250   : > { %6563 = vmatprep.mubr.f32.mxu0 %v8166_v47 }
 0x251   : > { %v8641_v5 = vand.u32 4294901760, %v4462_v49 }
 0x253   : > { %6564 = vmatmul.mubr.f32.gmra.mrb[22].mxu0 %v8193_v11  ;;  %5782 = vmatprep.mubr.f32.mxu1 %v8641_v5 }
 0x254   : > { %6566 = vmatprep.mubr.f32.mxu0 %v9790_v9 }
 0x257   : > { %6567 = vmatmul.mubr.f32.gmra.mrb[24].mxu0 %v9791_v50 }
 0x258   : > { %6569 = vmatprep.mubr.f32.mxu0 %v9792_v41 }
 0x25b   : > { %6570 = vmatmul.mubr.f32.gmra.mrb[26].mxu0 %v9793_v1 }
 0x25c   : > { %6572 = vmatprep.mubr.f32.mxu0 %v9794_v6 }
 0x25f   : > { %6573 = vmatmul.mubr.f32.gmra.mrb[28].mxu0 %v9795_v2 }
 0x260   : > { %6575 = vmatprep.mubr.f32.mxu0 %v9796_v15 }
 0x263   : > { %6576 = vmatmul.mubr.f32.gmra.mrb[30].mxu0 %v9797_v36 }
 0x2fa   : > { %v6532_v21 = vpop.f32.mrb[0].mxu0 }
 0x2fb   : > { %v6818_v23 = vadd.f32 %v6532_v21, %v8510_v30  ;;  %v3998_v38 = vpop.f32.mrb[1].mxu0 }
 0x2fc   : > { %v6819_v59 = vadd.f32 %v3998_v38, %v8512_v53 }
 0x2fd   : > { %v4196_v25 = vadd.f32 %v6818_v23, %v8647_v44 }
 0x2fe   : > { %v4195_v57 = vadd.f32 %v6819_v59, %v8647_v44  ;;  %v6535_v47 = vpop.f32.mrb[2].mxu0 }
 0x2ff   : > { %v4228_v11 = vmax.f32 %v4196_v25, 0.0  ;;  %v6820_v3 = vadd.f32 %v6535_v47, %v8516_v43  ;;  %v4010_v31 = vpop.f32.mrb[3].mxu0 }
 0x300   : > { %v4227_v13 = vmax.f32 %v4195_v57, 0.0  ;;  %v6821_v22 = vadd.f32 %v4010_v31, %v8518_v52 }
 0x301   : > { %v8656_v32 = vsel %vm4262_vm1, %v4228_v11, 0  ;;  %v4198_v27 = vadd.f32 %v6820_v3, %v8647_v44 }
 0x302   : > { %v4366_v24 = vand.u32 4294901760, %v8656_v32  ;;  %v8661_v19 = vsel %vm4262_vm1, %v4227_v13, 0  ;;  %v4197_v30 = vadd.f32 %v6821_v22, %v8647_v44  ;;  %v6538_v53 = vpop.f32.mrb[4].mxu0 }
 0x303   : > { %v9500_v9 = vand.u32 4294901760, %v8661_v19  ;;  %v4230_v43 = vmax.f32 %v4198_v27, 0.0  ;;  %v6822_v50 = vadd.f32 %v6538_v53, %v8522_v42  ;;  %v4022_v41 = vpop.f32.mrb[5].mxu0 }
 0x304   : > { %v4229_v52 = vmax.f32 %v4197_v30, 0.0  ;;  %v6823_v1 = vadd.f32 %v4022_v41, %v8524_v51 }
 0x305   : > { %v4276_v6 = vsel %vm4262_vm1, %v4230_v43, 0  ;;  %v4200_v2 = vadd.f32 %v6822_v50, %v8647_v44  ;;  %v8673_v15 = vpack.c.bf16 %v4366_v24, %v9500_v9 }
 0x306   : > { %v4372_v36 = vand.u32 4294901760, %v4276_v6  ;;  %v4273_v28 = vsel %vm4262_vm1, %v4229_v52, 0  ;;  %v4199_v0 = vadd.f32 %v6823_v1, %v8647_v44  ;;  %v6541_v42 = vpop.f32.mrb[6].mxu0 }
 0x307   : > { %9800 = vst [vmem:[#allocation47_spill] sm:$0xff] %v8673_v15  ;;  %v4369_v49 = vand.u32 4294901760, %v4273_v28  ;;  %v4232_v21 = vmax.f32 %v4200_v2, 0.0  ;;  %v6824_v51 = vadd.f32 %v6541_v42, %v8528_v26  ;;  %v4034_v23 = vpop.f32.mrb[7].mxu0 }
 0x308   : > { %v4231_v38 = vmax.f32 %v4199_v0, 0.0  ;;  %v6825_v59 = vadd.f32 %v4034_v23, %v8530_v37 }
 0x309   : > { %v4282_v25 = vsel %vm4262_vm1, %v4232_v21, 0  ;;  %v4202_v57 = vadd.f32 %v6824_v51, %v8647_v44  ;;  %v8681_v47 = vpack.c.bf16 %v4372_v36, %v4369_v49 }
 0x30a   : > { %v4378_v11 = vand.u32 4294901760, %v4282_v25  ;;  %v4279_v3 = vsel %vm4262_vm1, %v4231_v38, 0  ;;  %v4201_v31 = vadd.f32 %v6825_v59, %v8647_v44  ;;  %v6544_v13 = vpop.f32.mrb[8].mxu0 }
 0x30b   : > { %9801 = vst [vmem:[#allocation10_spill] sm:$0xff] %v8681_v47  ;;  %v4375_v22 = vand.u32 4294901760, %v4279_v3  ;;  %v4234_v27 = vmax.f32 %v4202_v57, 0.0  ;;  %v6826_v26 = vadd.f32 %v6544_v13, %v8534_v16  ;;  %v4046_v30 = vpop.f32.mrb[9].mxu0 }
 0x30c   : > { %v4233_v53 = vmax.f32 %v4201_v31, 0.0  ;;  %v6827_v37 = vadd.f32 %v4046_v30, %v8536_v58 }
 0x30d   : > { %v4288_v43 = vsel %vm4262_vm1, %v4234_v27, 0  ;;  %v4204_v50 = vadd.f32 %v6826_v26, %v8647_v44  ;;  %v8689_v41 = vpack.c.bf16 %v4378_v11, %v4375_v22 }
 0x30e   : > { %v4384_v52 = vand.u32 4294901760, %v4288_v43  ;;  %v4285_v1 = vsel %vm4262_vm1, %v4233_v53, 0  ;;  %v4203_v2 = vadd.f32 %v6827_v37, %v8647_v44  ;;  %v6547_v0 = vpop.f32.mrb[10].mxu0 }
 0x30f   : > { %9802 = vst [vmem:[#allocation48_spill] sm:$0xff] %v8689_v41  ;;  %v4381_v42 = vand.u32 4294901760, %v4285_v1  ;;  %v4236_v21 = vmax.f32 %v4204_v50, 0.0  ;;  %v6828_v16 = vadd.f32 %v6547_v0, %v8540_v54  ;;  %v4058_v51 = vpop.f32.mrb[11].mxu0  ;;  %v8702_v50 = vsub.f32 %v4276_v6, %v4372_v36 }
 0x310   : > { %v4235_v23 = vmax.f32 %v4203_v2, 0.0  ;;  %v6829_v58 = vadd.f32 %v4058_v51, %v8542_v55  ;;  %v8712_v51 = vsub.f32 %v8656_v32, %v4366_v24  ;;  %v8723_v24 = vsub.f32 %v4282_v25, %v4378_v11 }
 0x311   : > { %v4294_v38 = vsel %vm4262_vm1, %v4236_v21, 0  ;;  %v4206_v59 = vadd.f32 %v6828_v16, %v8647_v44  ;;  %v8697_v57 = vpack.c.bf16 %v4384_v52, %v4381_v42 }
 0x312   : > { %v4390_v31 = vand.u32 4294901760, %v4294_v38  ;;  %v4291_v13 = vsel %vm4262_vm1, %v4235_v23, 0  ;;  %v4205_v27 = vadd.f32 %v6829_v58, %v8647_v44  ;;  %v6550_v26 = vpop.f32.mrb[12].mxu0  ;;  %v8716_v58 = vsub.f32 %v4273_v28, %v4369_v49 }
 0x313   : > { %9803 = vst [vmem:[#allocation43_spill] sm:$0xff] %v8697_v57  ;;  %v4387_v30 = vand.u32 4294901760, %v4291_v13  ;;  %v4238_v53 = vmax.f32 %v4206_v59, 0.0  ;;  %v6830_v54 = vadd.f32 %v6550_v26, %v8546_v12  ;;  %v4070_v37 = vpop.f32.mrb[13].mxu0  ;;  %v8729_v49 = vsub.f32 %v4279_v3, %v4375_v22 }
 0x314   : > { %v4237_v55 = vmax.f32 %v4205_v27, 0.0  ;;  %v6831_v2 = vadd.f32 %v4070_v37, %v8548_v46 }
 0x315   : > { %v4300_v0 = vsel %vm4262_vm1, %v4238_v53, 0  ;;  %v4208_v21 = vadd.f32 %v6830_v54, %v8647_v44  ;;  %v8707_v16 = vpack.c.bf16 %v4390_v31, %v4387_v30  ;;  %v8720_v54 = vsub.f32 %v4288_v43, %v4384_v52 }
 0x316   : > { %v4396_v23 = vand.u32 4294901760, %v4300_v0  ;;  %v4297_v12 = vsel %vm4262_vm1, %v4237_v55, 0  ;;  %v4207_v6 = vadd.f32 %v6831_v2, %v8647_v44  ;;  %v6553_v36 = vpop.f32.mrb[14].mxu0 }
 0x317   : > { %9804 = vst [vmem:[#allocation11_spill] sm:$0xff] %v8707_v16  ;;  %v4393_v46 = vand.u32 4294901760, %v4297_v12  ;;  %v4240_v59 = vmax.f32 %v4208_v21, 0.0  ;;  %v6832_v27 = vadd.f32 %v6553_v36, %v8552_v35  ;;  %v4082_v26 = vpop.f32.mrb[15].mxu0 }
 0x318   : > { %v4239_v37 = vmax.f32 %v4207_v6, 0.0  ;;  %v6833_v32 = vadd.f32 %v4082_v26, %v8554_v34  ;;  %v8735_v6 = vsub.f32 %v4285_v1, %v4381_v42  ;;  %v8743_v26 = vsub.f32 %v4291_v13, %v4387_v30 }
 0x319   : > { %v4306_v55 = vsel %vm4262_vm1, %v4240_v59, 0  ;;  %v4210_v2 = vadd.f32 %v6832_v27, %v8647_v44  ;;  %v8727_v28 = vpack.c.bf16 %v4396_v23, %v4393_v46  ;;  %v8740_v27 = vsub.f32 %v4294_v38, %v4390_v31 }
 0x31a   : > { %v4402_v21 = vand.u32 4294901760, %v4306_v55  ;;  %v8732_v35 = vsel %vm4262_vm1, %v4239_v37, 0  ;;  %v4209_v43 = vadd.f32 %v6833_v32, %v8647_v44  ;;  %v6556_v52 = vpop.f32.mrb[16].mxu0  ;;  %v8751_v32 = vsub.f32 %v4300_v0, %v4396_v23 }
 0x31b   : > { %v4399_v34 = vand.u32 4294901760, %v8732_v35  ;;  %v4242_v25 = vmax.f32 %v4210_v2, 0.0  ;;  %v6834_v11 = vadd.f32 %v6556_v52, %v8558_v39  ;;  %v4094_v36 = vpop.f32.mrb[17].mxu0 }
 0x31c   : > { %v4241_v3 = vmax.f32 %v4209_v43, 0.0  ;;  %v6835_v22 = vadd.f32 %v4094_v36, %v8560_v56  ;;  %v8758_v56 = vsub.f32 %v4297_v12, %v4393_v46  ;;  %v8779_v9 = vsub.f32 %v4306_v55, %v4402_v21 }
 0x31d   : > { %v8746_v37 = vsel %vm4262_vm1, %v4242_v25, 0  ;;  %v4212_v1 = vadd.f32 %v6834_v11, %v8647_v44  ;;  %v8749_v42 = vpack.c.bf16 %v4402_v21, %v4399_v34 }
 0x31e   : > { %v9503_v39 = vand.u32 4294901760, %v8746_v37  ;;  %v8755_v2 = vsel %vm4262_vm1, %v4241_v3, 0  ;;  %v4211_v38 = vadd.f32 %v6835_v22, %v8647_v44  ;;  %v6559_v31 = vpop.f32.mrb[18].mxu0 }
 0x31f   : > { %v9502_v13 = vand.u32 4294901760, %v8755_v2  ;;  %v4244_v30 = vmax.f32 %v4212_v1, 0.0  ;;  %v6836_v43 = vadd.f32 %v6559_v31, %v8564_v48  ;;  %v4106_v52 = vpop.f32.mrb[19].mxu0 }
 0x320   : > { %v4243_v23 = vmax.f32 %v4211_v38, 0.0  ;;  %v6837_v11 = vadd.f32 %v4106_v52, %v8566_v60 }
 0x321   : > { %v4318_v3 = vsel %vm4262_vm1, %v4244_v30, 0  ;;  %v4214_v12 = vadd.f32 %v6836_v43, %v8647_v44  ;;  %v8772_v46 = vpack.c.bf16 %v9503_v39, %v9502_v13 }
 0x322   : > { %v4414_v22 = vand.u32 4294901760, %v4318_v3  ;;  %v4315_v1 = vsel %vm4262_vm1, %v4243_v23, 0  ;;  %v4213_v38 = vadd.f32 %v6837_v11, %v8647_v44  ;;  %v6562_v60 = vpop.f32.mrb[20].mxu0 }
 0x323   : > { %v4411_v52 = vand.u32 4294901760, %v4315_v1  ;;  %v4246_v30 = vmax.f32 %v4214_v12, 0.0  ;;  %v6838_v43 = vadd.f32 %v6562_v60, %v8570_v63  ;;  %v4118_v53 = vpop.f32.mrb[21].mxu0 }
 0x324   : > { %v8781_v0 = vsub.f32 %v4318_v3, %v4414_v22  ;;  %v4245_v36 = vmax.f32 %v4213_v38, 0.0  ;;  %v6839_v48 = vadd.f32 %v4118_v53, %v8572_v18 }
 0x325   : > { %v8784_v59 = vsub.f32 %v4315_v1, %v4411_v52  ;;  %v4324_v23 = vsel %vm4262_vm1, %v4246_v30, 0  ;;  %v4216_v11 = vadd.f32 %v6838_v43, %v8647_v44  ;;  %v8788_v25 = vpack.c.bf16 %v4414_v22, %v4411_v52 }
 0x326   : > { %v4420_v31 = vand.u32 4294901760, %v4324_v23  ;;  %v4321_v12 = vsel %vm4262_vm1, %v4245_v36, 0  ;;  %v4215_v63 = vadd.f32 %v6839_v48, %v8647_v44  ;;  %v6565_v55 = vpop.f32.mrb[22].mxu0  ;;  %v9501_v21 = vand.u32 4294901760, %v8781_v0 }
 0x327   : > { %9805 = vst [vmem:[#allocation51_spill] sm:$0xff] %v8788_v25  ;;  %v4417_v3 = vand.u32 4294901760, %v4321_v12  ;;  %v4248_v38 = vmax.f32 %v4216_v11, 0.0  ;;  %v6840_v18 = vadd.f32 %v6565_v55, %v8576_v8  ;;  %v4130_v53 = vpop.f32.mrb[23].mxu0  ;;  %6627 = vmatprep.subr.bf16.mxu1 %v8788_v25  ;;  %v9504_v1 = vand.u32 4294901760, %v8784_v59 }
 0x328   : > { %v8797_v22 = vsub.f32 %v8732_v35, %v4399_v34  ;;  %v4247_v60 = vmax.f32 %v4215_v63, 0.0  ;;  %v6841_v36 = vadd.f32 %v4130_v53, %v8578_v61  ;;  %6629 = vmatpush3.bf16.xpose.msra.mxu1 %v8673_v15  ;;  %v4593_v48 = vsub.f32 %v8781_v0, %v9501_v21 }
 0x329   : > { %v8804_v52 = vsub.f32 %v4321_v12, %v4417_v3  ;;  %v4330_v8 = vsel %vm4262_vm1, %v4248_v38, 0  ;;  %v4218_v30 = vadd.f32 %v6840_v18, %v8647_v44  ;;  %v8808_v43 = vpack.c.bf16 %v4420_v31, %v4417_v3 }
 0x32a   : > { %v4426_v11 = vand.u32 4294901760, %v4330_v8  ;;  %v4327_v35 = vsel %vm4262_vm1, %v4247_v60, 0  ;;  %v4217_v34 = vadd.f32 %v6841_v36, %v8647_v44  ;;  %v6568_v61 = vpop.f32.mrb[24].mxu0  ;;  %v4586_v63 = vsub.f32 %v8784_v59, %v9504_v1 }
 0x32b   : > { %9806 = vst [vmem:[#allocation12_spill] sm:$0xff] %v8808_v43  ;;  %v4423_v55 = vand.u32 4294901760, %v4327_v35  ;;  %v4250_v53 = vmax.f32 %v4218_v30, 0.0  ;;  %v6842_v12 = vadd.f32 %v6568_v61, %v8582_v40  ;;  %v4142_v21 = vpop.f32.mrb[25].mxu0  ;;  %6631 = vmatprep.subr.bf16.mxu1 %v8808_v43  ;;  %v4594_v38 = vand.u32 4294901760, %v4593_v48 }
 0x32c   : > { %v8817_v3 = vsub.f32 %v4324_v23, %v4420_v31  ;;  %v4249_v18 = vmax.f32 %v4217_v34, 0.0  ;;  %v6843_v60 = vadd.f32 %v4142_v21, %v8584_v62  ;;  %v4587_v13 = vand.u32 4294901760, %v4586_v63 }
 0x32d   : > { %v8822_v39 = vsel %vm4262_vm1, %v4250_v53, 0  ;;  %v4220_v1 = vadd.f32 %v6842_v12, %v8647_v44  ;;  %v8825_v30 = vpack.c.bf16 %v4426_v11, %v4423_v55  ;;  %v9516_v53 = vand.u32 4294901760, %v8804_v52 }
 0x32e   : > { %v9507_v40 = vand.u32 4294901760, %v8822_v39  ;;  %v4333_v61 = vsel %vm4262_vm1, %v4249_v18, 0  ;;  %v4219_v31 = vadd.f32 %v6843_v60, %v8647_v44  ;;  %v6571_v23 = vpop.f32.mrb[26].mxu0  ;;  %v8830_v48 = vpack.c.bf16 %v4594_v38, %v4587_v13 }
 0x32f   : > { %9807 = vst [vmem:[#allocation52_spill] sm:$0xff] %v8825_v30  ;;  %v4429_v62 = vand.u32 4294901760, %v4333_v61  ;;  %v4252_v21 = vmax.f32 %v4220_v1, 0.0  ;;  %v6844_v34 = vadd.f32 %v6571_v23, %v8588_v20  ;;  %v4154_v63 = vpop.f32.mrb[27].mxu0  ;;  %v9517_v18 = vand.u32 4294901760, %v8817_v3 }
 0x330   : > { %v4251_v36 = vmax.f32 %v4219_v31, 0.0  ;;  %v6845_v43 = vadd.f32 %v4154_v63, %v8590_v10  ;;  %6633 = vmatpush3.bf16.xpose.msra.mxu1 %v8681_v47  ;;  %v9808_v60 = vand.u32 4294901760, %v8746_v37  ;;  %v8865_v15 = vsub.f32 %v4330_v8, %v4426_v11 }
 0x331   : > { %v4342_v1 = vsel %vm4262_vm1, %v4252_v21, 0  ;;  %v4222_v20 = vadd.f32 %v6844_v34, %v8647_v44  ;;  %6635 = vmatprep.subr.bf16.mxu1 %v8825_v30  ;;  %v8848_v38 = vpack.c.bf16 %v9507_v40, %v4429_v62  ;;  %v4607_v40 = vsub.f32 %v8817_v3, %v9517_v18 }
 0x332   : > { %v8841_v13 = vsub.f32 %v8746_v37, %v9808_v60  ;;  %v4438_v10 = vand.u32 4294901760, %v4342_v1  ;;  %v4339_v31 = vsel %vm4262_vm1, %v4251_v36, 0  ;;  %v4221_v23 = vadd.f32 %v6845_v43, %v8647_v44  ;;  %v6574_v63 = vpop.f32.mrb[28].mxu0 }
 0x333   : > { %9809 = vst [vmem:[#allocation13_spill] sm:$0xff] %v8848_v38  ;;  %v4600_v37 = vsub.f32 %v8804_v52, %v9516_v53  ;;  %v4435_v60 = vand.u32 4294901760, %v4339_v31  ;;  %v4254_v21 = vmax.f32 %v4222_v20, 0.0  ;;  %v6846_v34 = vadd.f32 %v6574_v63, %v8594_v4  ;;  %v4166_v12 = vpop.f32.mrb[29].mxu0 }
 0x334   : > { %v9810_v30 = vand.u32 4294901760, %v8755_v2  ;;  %v4253_v43 = vmax.f32 %v4221_v23, 0.0  ;;  %v6847_v47 = vadd.f32 %v4166_v12, %v8596_v29 }
 0x335   : > { %v4601_v33 = vand.u32 4294901760, %v4600_v37  ;;  %v4348_v20 = vsel %vm4262_vm1, %v4254_v21, 0  ;;  %v4224_v4 = vadd.f32 %v6846_v34, %v8647_v44  ;;  %v8869_v63 = vpack.c.bf16 %v4438_v10, %v4435_v60 }
 0x336   : > { %v8862_v36 = vsub.f32 %v8755_v2, %v9810_v30  ;;  %v4444_v53 = vand.u32 4294901760, %v4348_v20  ;;  %v4345_v18 = vsel %vm4262_vm1, %v4253_v43, 0  ;;  %v4223_v25 = vadd.f32 %v6847_v47, %v8647_v44  ;;  %v6577_v17 = vpop.f32.mrb[30].mxu0 }
 0x337   : > { %9811 = vst [vmem:[#allocation54_spill] sm:$0xff] %v8869_v63  ;;  %v4608_v2 = vand.u32 4294901760, %v4607_v40  ;;  %v8873_v30 = vsub.f32 %v4327_v35, %v4423_v55  ;;  %v4441_v23 = vand.u32 4294901760, %v4345_v18  ;;  %v4256_v29 = vmax.f32 %v4224_v4, 0.0  ;;  %v4178_v11 = vpop.f32.mrb[31].mxu0 }
 0x338   : > { %v6848_v8 = vadd.f32 %v6577_v17, %v8600_v7  ;;  %v4255_v37 = vmax.f32 %v4223_v25, 0.0  ;;  %v6849_v21 = vadd.f32 %v4178_v11, %v8602_v14  ;;  %6637 = vmatpush3.bf16.xpose.msra.mxu1 %v8689_v41  ;;  %v8887_v7 = vsub.f32 %v4333_v61, %v4429_v62 }
 0x339   : > { %v8879_v34 = vpack.c.bf16 %v4608_v2, %v4601_v33  ;;  %v4354_v40 = vsel %vm4262_vm1, %v4256_v29, 0  ;;  %6639 = vmatprep.subr.bf16.mxu1 %v8848_v38  ;;  %v8885_v55 = vpack.c.bf16 %v4444_v53, %v4441_v23  ;;  %v9525_v4 = vand.u32 4294901760, %v8873_v30 }
 0x33a   : > { %v4226_v35 = vadd.f32 %v6848_v8, %v8647_v44  ;;  %v4450_v17 = vand.u32 4294901760, %v4354_v40  ;;  %v4351_v25 = vsel %vm4262_vm1, %v4255_v37, 0  ;;  %v4225_v14 = vadd.f32 %v6849_v21, %v8647_v44 }
 0x33b   : > { %9812 = vst [vmem:[#allocation14_spill] sm:$0xff] %v8885_v55  ;;  %v4447_v43 = vand.u32 4294901760, %v4351_v25  ;;  %v9523_v2 = vand.u32 4294901760, %v8865_v15  ;;  %v9813_v29 = vand.u32 4294901760, %v8822_v39  ;;  %v8898_v11 = vsub.f32 %v4342_v1, %v4438_v10 }
 0x33c   : > { %v4258_v33 = vmax.f32 %v4226_v35, 0.0  ;;  %v8900_v61 = vsub.f32 %v4339_v31, %v4435_v60  ;;  %v4257_v62 = vmax.f32 %v4225_v14, 0.0  ;;  %v8902_v12 = vsub.f32 %v4348_v20, %v4444_v53 }
 0x33d   : > { %v8896_v8 = vsub.f32 %v8822_v39, %v9813_v29  ;;  %v8905_v37 = vpack.c.bf16 %v4450_v17, %v4447_v43  ;;  %v4614_v21 = vsub.f32 %v8873_v30, %v9525_v4  ;;  %v8910_v35 = vsub.f32 %v4345_v18, %v4441_v23 }
 0x33e   : > { %v4360_v44 = vsel %vm4262_vm1, %v4258_v33, 0  ;;  %v4357_v39 = vsel %vm4262_vm1, %v4257_v62, 0  ;;  %v4621_v1 = vsub.f32 %v8865_v15, %v9523_v2  ;;  %v8916_v10 = vsub.f32 %v4354_v40, %v4450_v17 }
 0x33f   : > { %9814 = vst [vmem:[#allocation34_spill] sm:$0xff] %v8905_v37  ;;  %v4456_v47 = vand.u32 4294901760, %v4360_v44  ;;  %v4453_v53 = vand.u32 4294901760, %v4357_v39  ;;  %v4615_v31 = vand.u32 4294901760, %v4614_v21  ;;  %v9522_v60 = vand.u32 4294901760, %v8887_v7 }
 0x340   : > { %v8919_v20 = vsub.f32 %v4351_v25, %v4447_v43  ;;  %6641 = vmatpush3.bf16.xpose.msra.mxu1 %v8697_v57  ;;  %v4622_v14 = vand.u32 4294901760, %v4621_v1  ;;  %v9524_v18 = vand.u32 4294901760, %v8896_v8  ;;  %v9815_v23 = vand.u32 4294901760, %v8735_v6 }
 0x341   : > { %v8926_v29 = vsub.f32 %v4360_v44, %v4456_v47  ;;  %v8928_v62 = vsub.f32 %v4357_v39, %v4453_v53  ;;  %6643 = vmatprep.subr.bf16.mxu1 %v8869_v63  ;;  %v8931_v40 = vpack.c.bf16 %v4456_v47, %v4453_v53  ;;  %v4628_v17 = vsub.f32 %v8887_v7, %v9522_v60 }
 0x342   : > { %v4516_v33 = vsub.f32 %v8735_v6, %v9815_v23  ;;  %v8936_v25 = vpack.c.bf16 %v4622_v14, %v4615_v31  ;;  %v4635_v43 = vsub.f32 %v8896_v8, %v9524_v18  ;;  %v9816_v44 = vand.u32 4294901760, %v8720_v54 }
 0x343   : > { %v4629_v1 = vand.u32 4294901760, %v4628_v17  ;;  %v9532_v23 = vand.u32 4294901760, %v8900_v61  ;;  %v9533_v47 = vand.u32 4294901760, %v8898_v11  ;;  %v9817_v53 = vand.u32 4294901760, %v8743_v26 }
 0x344   : > { %v4517_v21 = vand.u32 4294901760, %v4516_v33  ;;  %v4523_v39 = vsub.f32 %v8720_v54, %v9816_v44  ;;  %v4636_v31 = vand.u32 4294901760, %v4635_v43  ;;  %v9818_v2 = vand.u32 4294901760, %v8740_v27 }
 0x345   : > { %v4530_v60 = vsub.f32 %v8743_v26, %v9817_v53  ;;  %v9535_v33 = vand.u32 4294901760, %v8910_v35  ;;  %v4642_v17 = vsub.f32 %v8900_v61, %v9532_v23  ;;  %v4649_v44 = vsub.f32 %v8898_v11, %v9533_v47 }
 0x346   : > { %v4524_v14 = vand.u32 4294901760, %v4523_v39  ;;  %v4537_v18 = vsub.f32 %v8740_v27, %v9818_v2  ;;  %v9534_v63 = vand.u32 4294901760, %v8902_v12  ;;  %v8960_v53 = vpack.c.bf16 %v4636_v31, %v4629_v1 }
 0x347   : > { %v4531_v4 = vand.u32 4294901760, %v4530_v60  ;;  %v4656_v2 = vsub.f32 %v8910_v35, %v9535_v33  ;;  %v4643_v57 = vand.u32 4294901760, %v4642_v17  ;;  %v4650_v38 = vand.u32 4294901760, %v4649_v44 }
 0x348   : > { %9819 = vst [vmem:[#allocation15_spill] sm:$0xff] %v8960_v53  ;;  %v8962_v43 = vpack.c.bf16 %v4524_v14, %v4517_v21  ;;  %v4538_v39 = vand.u32 4294901760, %v4537_v18  ;;  %v4663_v23 = vsub.f32 %v8902_v12, %v9534_v63  ;;  %v9821_v47 = vand.u32 4294901760, %v8758_v56  ;;  %6645 = vmatpush3.bf16.xpose.msra.mxu1 %v8707_v16 }
 0x349   : > { %v4657_v21 = vand.u32 4294901760, %v4656_v2  ;;  %v9823_v18 = vand.u32 4294901760, %v8751_v32  ;;  %v4669_v14 = vand.u32 4294901760, %v8919_v20  ;;  %6647 = vmatprep.subr.bf16.mxu1 %v8885_v55  ;;  %v8981_v17 = vpack.c.bf16 %v4650_v38, %v4643_v57 }
 0x34a   : > { %9820 = vst [vmem:[#allocation36_spill] sm:$0xff] %v8962_v43  ;;  %v4544_v60 = vsub.f32 %v8758_v56, %v9821_v47  ;;  %v8974_v1 = vpack.c.bf16 %v4538_v39, %v4531_v4  ;;  %v4664_v44 = vand.u32 4294901760, %v4663_v23  ;;  %v4676_v33 = vand.u32 4294901760, %v8916_v10 }
 0x34b   : > { %v4551_v31 = vsub.f32 %v8751_v32, %v9823_v18  ;;  %9824 = vst [vmem:[#allocation17_spill] sm:$0xff] %v8981_v17  ;;  %v4670_v16 = vsub.f32 %v8919_v20, %v4669_v14  ;;  %v9825_v4 = vand.u32 4294901760, %v8797_v22  ;;  %v9826_v2 = vand.u32 4294901760, %v8779_v9 }
 0x34c   : > { %9822 = vst [vmem:[#allocation16_spill] sm:$0xff] %v8974_v1  ;;  %v4545_v63 = vand.u32 4294901760, %v4544_v60  ;;  %v8991_v41 = vpack.c.bf16 %v4664_v44, %v4657_v21  ;;  %v4677_v57 = vsub.f32 %v8916_v10, %v4676_v33  ;;  %v4683_v38 = vand.u32 4294901760, %v8928_v62 }
 0x34d   : > { %v4552_v47 = vand.u32 4294901760, %v4551_v31  ;;  %v4558_v39 = vsub.f32 %v8797_v22, %v9825_v4  ;;  %v4565_v18 = vsub.f32 %v8779_v9, %v9826_v2  ;;  %v4690_v23 = vand.u32 4294901760, %v8926_v29 }
 0x34e   : > { %9827 = vst [vmem:[#allocation18_spill] sm:$0xff] %v8991_v41  ;;  %v4671_v31 = vand.u32 4294901760, %v4670_v16  ;;  %v4678_v17 = vand.u32 4294901760, %v4677_v57  ;;  %v4684_v4 = vsub.f32 %v8928_v62, %v4683_v38  ;;  %v9829_v2 = vand.u32 4294901760, %v8862_v36 }
 0x34f   : > { %v8996_v60 = vpack.c.bf16 %v4552_v47, %v4545_v63  ;;  %v4559_v55 = vand.u32 4294901760, %v4558_v39  ;;  %v4566_v1 = vand.u32 4294901760, %v4565_v18  ;;  %v4691_v43 = vsub.f32 %v8926_v29, %v4690_v23 }
 0x350   : > { %v4572_v21 = vsub.f32 %v8862_v36, %v9829_v2  ;;  %v4487_v44 = vand.u32 4294901760, %v8716_v58  ;;  %v9830_v53 = vand.u32 4294901760, %v8841_v13  ;;  %v9011_v47 = vpack.c.bf16 %v4678_v17, %v4671_v31  ;;  %6649 = vmatpush3.bf16.xpose.msra.mxu1 %v8727_v28 }
 0x351   : > { %9828 = vst [vmem:[#allocation19_spill] sm:$0xff] %v8996_v60  ;;  %v9004_v41 = vpack.c.bf16 %v4566_v1, %v4559_v55  ;;  %v4685_v39 = vand.u32 4294901760, %v4684_v4  ;;  %v4692_v18 = vand.u32 4294901760, %v4691_v43  ;;  %v4508_v60 = vand.u32 4294901760, %v8723_v24  ;;  %6651 = vmatprep.subr.bf16.mxu1 %v8905_v37 }
 0x352   : > { %v4579_v63 = vsub.f32 %v8841_v13, %v9830_v53  ;;  %v4573_v57 = vand.u32 4294901760, %v4572_v21  ;;  %v4501_v53 = vand.u32 4294901760, %v8729_v49  ;;  %v9836_v43 = vand.u32 4294901760, %v8817_v3 }
 0x353   : > { %v9021_v17 = vpack.c.bf16 %v4692_v18, %v4685_v39  ;;  %v9833_v39 = vand.u32 4294901760, %v8781_v0  ;;  %v9835_v18 = vand.u32 4294901760, %v8804_v52 }
 0x354   : > { %v4580_v2 = vand.u32 4294901760, %v4579_v63  ;;  %v9832_v63 = vand.u32 4294901760, %v8784_v59  ;;  %v9070_v37 = vpack.c.bf16 %v4508_v60, %v4501_v53 }
 0x355   : > { %v9058_v55 = vpack.c.bf16 %v9836_v43, %v9835_v18  ;;  %v9847_v43 = vand.u32 4294901760, %v8735_v6  ;;  %v9848_v18 = vand.u32 4294901760, %v8720_v54 }
 0x356   : > { %v6688_v4 = vpack.c.bf16 %v4580_v2, %v4573_v57  ;;  %v9831_v2 = vand.u32 4294901760, %v8661_v19  ;;  %v9052_v31 = vpack.c.bf16 %v9833_v39, %v9832_v63  ;;  %v9838_v57 = vand.u32 4294901760, %v8702_v50  ;;  %9843 = vst [vmem:[#allocation24_spill] sm:$0xff] %v9070_v37 }
 0x357   : > { %9837 = vst [vmem:[#allocation21_spill] sm:$0xff] %v9058_v55  ;;  %v9844_v63 = vand.u32 4294901760, %v8887_v7  ;;  %v9845_v39 = vand.u32 4294901760, %v8896_v8  ;;  %v9851_v55 = vand.u32 4294901760, %v8898_v11  ;;  %v9854_v37 = vand.u32 4294901760, %v8740_v27 }
 0x358   : > { %v9044_v21 = vsub.f32 %v8661_v19, %v9831_v2  ;;  %9834 = vst [vmem:[#allocation20_spill] sm:$0xff] %v9052_v31  ;;  %v9062_v16 = vpack.c.bf16 %v9838_v57, %v4487_v44  ;;  %v9840_v19 = vand.u32 4294901760, %v8873_v30  ;;  %v9841_v2 = vand.u32 4294901760, %v8865_v15  ;;  %6653 = vmatpush3.bf16.xpose.msra.mxu1 %v8749_v42 }
 0x359   : > { %v9076_v31 = vpack.c.bf16 %v9845_v39, %v9844_v63  ;;  %v9082_v57 = vpack.c.bf16 %v9848_v18, %v9847_v43  ;;  %v9855_v63 = vand.u32 4294901760, %v8910_v35  ;;  %v9856_v39 = vand.u32 4294901760, %v8902_v12  ;;  %6655 = vmatprep.subr.bf16.mxu1 %v8931_v40 }
 0x35a   : > { %9839 = vst [vmem:[#allocation22_spill] sm:$0xff] %v9062_v16  ;;  %v9068_v1 = vpack.c.bf16 %v9841_v2, %v9840_v19  ;;  %v9850_v16 = vand.u32 4294901760, %v8900_v61  ;;  %v9853_v2 = vand.u32 4294901760, %v8743_v26  ;;  %v9858_v43 = vand.u32 4294901760, %v8758_v56 }
 0x35b   : > { %9846 = vst [vmem:[#allocation25_spill] sm:$0xff] %v9076_v31  ;;  %9849 = vst [vmem:[#allocation26_spill] sm:$0xff] %v9082_v57  ;;  %v9100_v31 = vpack.c.bf16 %v9856_v39, %v9855_v63  ;;  %v9859_v18 = vand.u32 4294901760, %v8751_v32  ;;  %v9862_v63 = vand.u32 4294901760, %v8862_v36  ;;  %v9863_v39 = vand.u32 4294901760, %v8841_v13 }
 0x35c   : > { %9842 = vst [vmem:[#allocation23_spill] sm:$0xff] %v9068_v1  ;;  %v9088_v19 = vpack.c.bf16 %v9851_v55, %v9850_v16  ;;  %v9094_v1 = vpack.c.bf16 %v9854_v37, %v9853_v2  ;;  %v9108_v16 = vpack.c.bf16 %v4676_v33, %v4669_v14  ;;  %v9860_v55 = vand.u32 4294901760, %v8797_v22 }
 0x35d   : > { %9857 = vst [vmem:[#allocation28_spill] sm:$0xff] %v9100_v31  ;;  %v9106_v57 = vpack.c.bf16 %v9859_v18, %v9858_v43  ;;  %v9116_v2 = vpack.c.bf16 %v4690_v23, %v4683_v38  ;;  %v9123_v31 = vpack.c.bf16 %v9863_v39, %v9862_v63  ;;  %v9544_v33 = vand.u32 4294901760, %v8712_v51 }
 0x35e   : > { %9852 = vst [vmem:[#allocation27_spill] sm:$0xff] %v9088_v19  ;;  %v9861_v19 = vand.u32 4294901760, %v8779_v9  ;;  %v9545_v14 = vand.u32 4294901760, %v9044_v21  ;;  %v9865_v63 = vand.u32 4294901760, %v8702_v50 }
 0x35f   : > { %9864 = vst [vmem:[#allocation29_spill] sm:$0xff] %v9123_v31  ;;  %v4481_v38 = vsub.f32 %v8712_v51, %v9544_v33 }
 0x360   : > { %v9114_v37 = vpack.c.bf16 %v9861_v19, %v9860_v55  ;;  %v4474_v19 = vsub.f32 %v9044_v21, %v9545_v14  ;;  %6657 = vmatpush3.bf16.xpose.msra.mxu1 %v8772_v46  ;;  %v4488_v55 = vsub.f32 %v8716_v58, %v4487_v44  ;;  %v4495_v39 = vsub.f32 %v8702_v50, %v9865_v63 }
 0x361   : > { %6659 = vmatprep.subr.bf16.mxu1 %v8830_v48  ;;  %v4482_v43 = vand.u32 4294901760, %v4481_v38  ;;  %v4502_v48 = vsub.f32 %v8729_v49, %v4501_v53  ;;  %v9871_v53 = vld [vmem:[#allocation19_spill] sm:$0xff] }
 0x362   : > { %v4475_v23 = vand.u32 4294901760, %v4474_v19  ;;  %v4489_v33 = vand.u32 4294901760, %v4488_v55  ;;  %v4496_v14 = vand.u32 4294901760, %v4495_v39  ;;  %v4509_v19 = vsub.f32 %v8723_v24, %v4508_v60  ;;  %v9906_v55 = vld [vmem:[#allocation25_spill] sm:$0xff]  ;;  %v9907_v63 = vld [vmem:[#allocation26_spill] sm:$0xff] }
 0x363   : > { %v4503_v44 = vand.u32 4294901760, %v4502_v48  ;;  %v6692_v60 = vpack.c.bf16 %v8712_v51, %v9044_v21 }
 0x364   : > { %v6660_v18 = vpack.c.bf16 %v4482_v43, %v4475_v23  ;;  %v6664_v31 = vpack.c.bf16 %v4496_v14, %v4489_v33  ;;  %v4510_v38 = vand.u32 4294901760, %v4509_v19  ;;  %v9867_v43 = vld [vmem:[#allocation36_spill] sm:$0xff]  ;;  %v9870_v33 = vld [vmem:[#allocation18_spill] sm:$0xff] }
 0x365   : > { %v9905_v14 = vld [vmem:[#allocation24_spill] sm:$0xff] }
 0x366   : > { %v6668_v23 = vpack.c.bf16 %v4510_v38, %v4503_v44  ;;  %v9910_v39 = vld [vmem:[#allocation29_spill] sm:$0xff] }
 0x367   : > { %5783 = vmatmul.mubr.f32.vlgmr.msra.gmra.mrb[32].mxu1 %v8641_v5  ;;  %v9866_v5 = vld [vmem:[#allocation15_spill] sm:$0xff] }
 0x368   : > { %6661 = vmatpush3.bf16.xpose.msra.mxu1 %v6660_v18  ;;  %5816 = vmatprep.mubr.f32.mxu1 %v8631_v45  ;;  %v9868_v18 = vld [vmem:[#allocation17_spill] sm:$0xff] }
 0x369   : > { %6663 = vmatprep.subr.bf16.mxu1 %v8879_v34  ;;  %v9869_v34 = vld [vmem:[#allocation16_spill] sm:$0xff] }
 0x370   : > { %6665 = vmatpush3.bf16.xpose.msra.mxu1 %v6664_v31  ;;  %v9873_v31 = vld [vmem:[#allocation8_spill] sm:$0xff] }
 0x371   : > { %6667 = vmatprep.subr.bf16.mxu1 %v8936_v25  ;;  %v9872_v25 = vpack.c.bf16 %v8781_v0, %v8784_v59  ;;  %v9875_v59 = vpack.c.bf16 %v8865_v15, %v8873_v30  ;;  %v6700_v0 = vpack.c.bf16 %v8723_v24, %v8729_v49  ;;  %v9879_v15 = vpack.c.bf16 %v8740_v27, %v8743_v26  ;;  %v9886_v26 = vld [vmem:[#allocation51_spill] sm:$0xff]  ;;  %v9892_v30 = vld [vmem:[#allocation48_spill] sm:$0xff] }
 0x372   : > { %v9881_v24 = vpack.c.bf16 %v8751_v32, %v8758_v56  ;;  %v9883_v49 = vpack.c.bf16 %v8779_v9, %v8797_v22  ;;  %v9885_v27 = vpack.c.bf16 %v8841_v13, %v8862_v36  ;;  %v9887_v32 = vld [vmem:[#allocation47_spill] sm:$0xff]  ;;  %v9888_v56 = vld [vmem:[#allocation9_spill] sm:$0xff]  ;;  %v9890_v9 = vld [vmem:[#allocation10_spill] sm:$0xff] }
 0x373   : > { %v9891_v22 = vld [vmem:[#allocation52_spill] sm:$0xff]  ;;  %v9894_v13 = vld [vmem:[#allocation43_spill] sm:$0xff]  ;;  %v9895_v36 = vld [vmem:[#allocation54_spill] sm:$0xff] }
 0x378   : > { %6669 = vmatpush3.bf16.xpose.msra.mxu1 %v6668_v23 }
 0x379   : > { %6671 = vmatprep.subr.bf16.mxu1 %v9866_v5 }
 0x380   : > { %6673 = vmatpush3.bf16.xpose.msra.mxu1 %v9867_v43 }
 0x381   : > { %6675 = vmatprep.subr.bf16.mxu1 %v9868_v18 }
 0x388   : > { %6677 = vmatpush3.bf16.xpose.msra.mxu1 %v9869_v34 }
 0x389   : > { %6679 = vmatprep.subr.bf16.mxu1 %v9870_v33 }
 0x390   : > { %6681 = vmatpush3.bf16.xpose.msra.mxu1 %v9871_v53 }
 0x391   : > { %6683 = vmatprep.subr.bf16.mxu1 %v9011_v47  ;;  %v9874_v47 = vpack.c.bf16 %v8817_v3, %v8804_v52  ;;  %v9877_v52 = vpack.c.bf16 %v8720_v54, %v8735_v6  ;;  %v9882_v54 = vpack.c.bf16 %v8916_v10, %v8919_v20  ;;  %v9884_v6 = vpack.c.bf16 %v8926_v29, %v8928_v62  ;;  %v9889_v3 = vld [vmem:[#allocation12_spill] sm:$0xff]  ;;  %v9902_v29 = vld [vmem:[#allocation21_spill] sm:$0xff]  ;;  %v9903_v62 = vld [vmem:[#allocation22_spill] sm:$0xff] }
 0x392   : > { %v9901_v10 = vand.u32 4294901760, %v8712_v51  ;;  %v9909_v51 = vld [vmem:[#allocation28_spill] sm:$0xff] }
 0x398   : > { %6685 = vmatpush3.bf16.xpose.msra.mxu1 %v9004_v41  ;;  %v6696_v41 = vpack.c.bf16 %v8702_v50, %v8716_v58  ;;  %v9878_v50 = vpack.c.bf16 %v8898_v11, %v8900_v61  ;;  %v9880_v58 = vpack.c.bf16 %v8902_v12, %v8910_v35  ;;  %v9893_v12 = vld [vmem:[#allocation13_spill] sm:$0xff]  ;;  %v9898_v11 = vld [vmem:[#allocation34_spill] sm:$0xff]  ;;  %v9899_v61 = vld [vmem:[#allocation20_spill] sm:$0xff]  ;;  %v9900_v35 = vand.u32 4294901760, %v9044_v21 }
 0x399   : > { %6687 = vmatprep.subr.bf16.mxu1 %v9021_v17  ;;  %v9876_v17 = vpack.c.bf16 %v8896_v8, %v8887_v7  ;;  %v9896_v7 = vld [vmem:[#allocation11_spill] sm:$0xff]  ;;  %v9897_v8 = vld [vmem:[#allocation14_spill] sm:$0xff] }
 0x39a   : > { %v6756_v20 = vpack.c.bf16 %v9901_v10, %v9900_v35  ;;  %v9908_v21 = vld [vmem:[#allocation27_spill] sm:$0xff] }
 0x3a0   : > { %6689 = vmatpush3.bf16.xpose.msra.mxu1 %v6688_v4  ;;  %v9904_v4 = vld [vmem:[#allocation23_spill] sm:$0xff] }
 0x3a1   : > { %6691 = vmatprep.subr.bf16.mxu1 %v9872_v25 }
 0x3a7   : > { %5817 = vmatmul.mubr.f32.vlgmr.msra.gmra.mrb[32].mxu1 %v8631_v45 }
 0x3a8   : > { %6693 = vmatpush3.bf16.xpose.msra.mxu1 %v6692_v60  ;;  %5850 = vmatprep.mubr.f32.mxu1 %v9873_v31 }
 0x3a9   : > { %6695 = vmatprep.subr.bf16.mxu1 %v9874_v47 }
 0x3b0   : > { %6697 = vmatpush3.bf16.xpose.msra.mxu1 %v6696_v41 }
 0x3b1   : > { %6699 = vmatprep.subr.bf16.mxu1 %v9875_v59 }
 0x3b8   : > { %6701 = vmatpush3.bf16.xpose.msra.mxu1 %v6700_v0 }
 0x3b9   : > { %6703 = vmatprep.subr.bf16.mxu1 %v9876_v17 }
 0x3c0   : > { %6705 = vmatpush3.bf16.xpose.msra.mxu1 %v9877_v52 }
 0x3c1   : > { %6707 = vmatprep.subr.bf16.mxu1 %v9878_v50 }
 0x3c8   : > { %6709 = vmatpush3.bf16.xpose.msra.mxu1 %v9879_v15 }
 0x3c9   : > { %6711 = vmatprep.subr.bf16.mxu1 %v9880_v58 }
 0x3d0   : > { %6713 = vmatpush3.bf16.xpose.msra.mxu1 %v9881_v24 }
 0x3d1   : > { %6715 = vmatprep.subr.bf16.mxu1 %v9882_v54 }
 0x3d8   : > { %6717 = vmatpush3.bf16.xpose.msra.mxu1 %v9883_v49 }
 0x3d9   : > { %6719 = vmatprep.subr.bf16.mxu1 %v9884_v6 }
 0x3e0   : > { %6721 = vmatpush3.bf16.xpose.msra.mxu1 %v9885_v27 }
 0x3e1   : > { %6723 = vmatprep.subr.bf16.mxu1 %v9886_v26 }
 0x3e7   : > { %5851 = vmatmul.mubr.f32.vlgmr.msra.gmra.mrb[32].mxu1 %v9873_v31 }
 0x3e8   : > { %6725 = vmatpush3.bf16.xpose.msra.mxu1 %v9887_v32  ;;  %5884 = vmatprep.mubr.f32.mxu1 %v9888_v56 }
 0x3e9   : > { %6727 = vmatprep.subr.bf16.mxu1 %v9889_v3 }
 0x3f0   : > { %6729 = vmatpush3.bf16.xpose.msra.mxu1 %v9890_v9 }
 0x3f1   : > { %6731 = vmatprep.subr.bf16.mxu1 %v9891_v22 }
 0x3f8   : > { %6733 = vmatpush3.bf16.xpose.msra.mxu1 %v9892_v30 }
 0x3f9   : > { %6735 = vmatprep.subr.bf16.mxu1 %v9893_v12 }
 0x400   : > { %6737 = vmatpush3.bf16.xpose.msra.mxu1 %v9894_v13 }
 0x401   : > { %6739 = vmatprep.subr.bf16.mxu1 %v9895_v36 }
 0x408   : > { %6741 = vmatpush3.bf16.xpose.msra.mxu1 %v9896_v7 }
 0x409   : > { %6743 = vmatprep.subr.bf16.mxu1 %v9897_v8 }
 0x410   : > { %6745 = vmatpush3.bf16.xpose.msra.mxu1 %v8727_v28 }
 0x411   : > { %6747 = vmatprep.subr.bf16.mxu1 %v9898_v11 }
 0x418   : > { %6749 = vmatpush3.bf16.xpose.msra.mxu1 %v8749_v42 }
 0x419   : > { %6751 = vmatprep.subr.bf16.mxu1 %v8931_v40 }
 0x420   : > { %6753 = vmatpush3.bf16.xpose.msra.mxu1 %v8772_v46 }
 0x421   : > { %6755 = vmatprep.subr.bf16.mxu1 %v9899_v61 }
 0x427   : > { %5885 = vmatmul.mubr.f32.vlgmr.msra.gmra.mrb[32].mxu1 %v9888_v56 }
 0x428   : > { %6757 = vmatpush3.bf16.xpose.msra.mxu1 %v6756_v20  ;;  %5918 = vmatprep.mubr.f32.mxu1 %v8631_v45 }
 0x429   : > { %6759 = vmatprep.subr.bf16.mxu1 %v9902_v29 }
 0x430   : > { %6761 = vmatpush3.bf16.xpose.msra.mxu1 %v9903_v62 }
 0x431   : > { %6763 = vmatprep.subr.bf16.mxu1 %v9904_v4 }
 0x438   : > { %6765 = vmatpush3.bf16.xpose.msra.mxu1 %v9905_v14 }
 0x439   : > { %6767 = vmatprep.subr.bf16.mxu1 %v9906_v55 }
 0x440   : > { %6769 = vmatpush3.bf16.xpose.msra.mxu1 %v9907_v63 }
 0x441   : > { %6771 = vmatprep.subr.bf16.mxu1 %v9908_v21 }
 0x448   : > { %6773 = vmatpush3.bf16.xpose.msra.mxu1 %v9094_v1  ;;  %v7286_v1 = vmov 1966171168  }
 0x449   : > { %6775 = vmatprep.subr.bf16.mxu1 %v9909_v51 }
 0x450   : > { %6777 = vmatpush3.bf16.xpose.msra.mxu1 %v9106_v57  ;;  %v5221_v57 = vunpack.c.l.s4 %v7286_v1 }
 0x451   : > { %6779 = vmatprep.subr.bf16.mxu1 %v9108_v16  ;;  %v5223_v16 = vlaneseq }
 0x453   : > { %v5224_v48 = vshrl.u32 %v5223_v16, 7  ;;  %vm5237_vm2 = vcmp.lt.s32.totalorder %v5223_v16, 256 }
 0x458   : > { %6781 = vmatpush3.bf16.xpose.msra.mxu1 %v9114_v37  ;;  %v4261_v37 = vstv %s4260_s20 }
 0x459   : > { %6783 = vmatprep.subr.bf16.mxu1 %v9116_v2  ;;  %v5222_v2 = vunpack.c.0.s8 %v5221_v57 }
 0x460   : > { %6785 = vmatpush3.bf16.xpose.msra.mxu1 %v9910_v39 }
 0x461   : > { %6787 = vmatprep.subr.bf16.mxu1 %v9886_v26 }
 0x467   : > { %5919 = vmatmul.mubr.f32.vlgmr.msra.gmra.mrb[32].mxu1 %v8631_v45 }
 0x468   : > { %6789 = vmatpush3.bf16.xpose.msra.mxu1 %v9887_v32  ;;  %5952 = vmatprep.mubr.f32.mxu1 %v8631_v45 }
 0x469   : > { %6791 = vmatprep.subr.bf16.mxu1 %v9889_v3 }
 0x470   : > { %6793 = vmatpush3.bf16.xpose.msra.mxu1 %v9890_v9 }
 0x471   : > { %6795 = vmatprep.subr.bf16.mxu1 %v9891_v22 }
 0x478   : > { %6797 = vmatpush3.bf16.xpose.msra.mxu1 %v9892_v30 }
 0x479   : > { %6799 = vmatprep.subr.bf16.mxu1 %v9893_v12 }
 0x480   : > { %6801 = vmatpush3.bf16.xpose.msra.mxu1 %v9894_v13 }
 0x481   : > { %6803 = vmatprep.subr.bf16.mxu1 %v9895_v36 }
 0x488   : > { %6805 = vmatpush3.bf16.xpose.msra.mxu1 %v9896_v7 }
 0x489   : > { %6807 = vmatprep.subr.bf16.mxu1 %v9897_v8 }
 0x490   : > { %6809 = vmatpush3.bf16.xpose.msra.mxu1 %v8727_v28 }
 0x491   : > { %6811 = vmatprep.subr.bf16.mxu1 %v9898_v11 }
 0x498   : > { %6813 = vmatpush3.bf16.xpose.msra.mxu1 %v8749_v42 }
 0x499   : > { %6815 = vmatprep.subr.bf16.mxu1 %v8931_v40  ;;  %v5225_v40 = vsub.s32 %v5222_v2, %v5224_v48 }
 0x4a0   : > { %6817 = vmatpush3.bf16.xpose.msra.mxu1 %v8772_v46 }
 0x4a7   : > { %5953 = vmatmul.mubr.f32.vlgmr.msra.gmra.mrb[32].mxu1 %v8631_v45 }
 0x57a   : > { %v5212_v28 = vpop.f32.mrb[32].mxu1 }
 0x57b   : > { %v6850_v19 = vadd.f32 %v5212_v28, %v4261_v37  ;;  %v5214_v42 = vpop.f32.mrb[33].mxu1 }
 0x57c   : > { %v6851_v44 = vadd.f32 %v5214_v42, %v4261_v37 }
 0x57e   : > { %v5219_v38 = vcombine.low %v6850_v19, %v6851_v44 }
 0x580   : > { %v5226_v45 = vrot.slane %v5219_v38, %v5225_v40 }
 0x582   : > { %v5233_v46 = vrot.slane %v5226_v45, %v5225_v40 }
 0x584   : > { %5239 = vst.msk [vmem:[%s313_s23] sm:$0x3] %vm5237_vm2, %v5233_v46 }
 0x585   : > { %7235 = shalt.err (!%p7232_p3)
}
 0x586   : > { %s7236_s18 = scalar_lea.hbm %s9265_s30, 32  ;;  %s7240_s20 = scalar_lea.hbm %s9314_s7, 96 }
 0x587   : > { %p7237_p4 = scmp.ne.s32.totalorder %s9265_s30, %s7236_s18  ;;  %p7241_p9 = scmp.lt.u32.totalorder %s9265_s30, %s9314_s7 }
 0x588   : > { %p7242_p10 = scmp.lt.u32.totalorder %s7240_s20, %s7236_s18  ;;  %p7244_p12 = scmp.lt.u32.totalorder %s7236_s18, %s9265_s30 }
 0x589   : > { %p7238_p7 = pnand %p7237_p4, %p7366_p5 }
 0x58a   : > { %p7243_p11 = por %p7242_p10, %p7241_p9 }
 0x58b   : > { %p7239_p8 = pneg %p7238_p7 }
 0x58c   : > { %p7245_p13 = por %p7244_p12, %p7243_p11 }
 0x58e   : > { %p7246_p0 = pnand %p7245_p13, %p7239_p8 }
 0x590   : > { %7249 = shalt.err (!%p7246_p0)
}
 0x591   : > { %7182 = dma.vmem_to_hbm [thread:$0]  (%p7366_p5), %s9267_s24, 32, %s9265_s30, %s5241_s9  }
 0x592 PF: > { %p7188_p1 = scmp.ge.s32.totalorder %s7284_s29, 2  ;;  %s5267_s23 = sand.u32 1, %s7272_s26  }
 0x593   : > { %s5268_s25 = scalar_lea.sflag [#allocation4], %s5267_s23 }
 0x594   : > { %p7185_p2 = pnand %p7188_p1, %p7370_p6 }
 0x596   : > { %7267 = dma.done.wait (!%p7185_p2), %s5268_s25, 32  }
 0x597   : > { %7269 = vsyncadd (!%p7185_p2), %s5268_s25, 4294967264  ;;  %p18_p3 = scmp.ge.s32.totalorder %s7354_s8, 5   ;;  %s9911_s26 = smov %s7276_s27 }
 0x598   : > { %s9912_s27 = smov %s7280_s28  ;;  %s9913_s28 = smov %s7364_s11 }
 0x599   : > { %s9914_s29 = smov %s7354_s8  ;;  %20 = sbr.rel (!%p18_p3) target bundleno = 5 (0x5), region = 86 }
 0x5a0   :  { %5273 = vsyncpa [#allocation4], 1 }
 0x5a1   :  { %5275 = vsyncpa [#allocation4 + $0x1], 1 }

</bundles_post_ra>
